<compile_context>
chip_gen: v7x
topology: tpu7x:2x2x1
jax: 0.10.0
libtpu: 0.0.40
codegen_flags: <defaults>
</compile_context>

<pallas_src>
import functools
from typing import NamedTuple

import jax
import jax.numpy as jnp
import numpy as np
from jax.experimental import pallas as pl
from jax.experimental.pallas import tpu as pltpu

_LANE = 128


def _round_up(x, m):
    return (x + m - 1) // m * m


# --------------------------------------------------------------------- geometry
class _Geom(NamedTuple):
    OH: int
    OW: int
    Hph: int          # phase height (row-padded output rows needed)
    Wph: int          # phase width  (row-padded output width)
    n_phases: int     # dh * dw
    phase_len: int    # Hph * Wph
    s_valid: int      # OH * Wph   (row-padded spatial extent actually used)
    s_pad: int        # round_up(s_valid, 128)
    lp: int           # padded flat length of x per (n, c)
    taps: tuple       # flat x offset for each kernel tap, ki-major / kj-minor


def _geometry(OH, OW, kh, kw, dh, dw):
    Hph = OH + (kh - 1) // dh
    Wph = OW + (kw - 1) // dw
    n_ph = dh * dw
    phase_len = Hph * Wph
    s_valid = OH * Wph
    s_pad = _round_up(max(s_valid, _LANE), _LANE)
    taps = []
    for ki in range(kh):
        for kj in range(kw):
            p = (ki % dh) * dw + (kj % dw)
            taps.append(p * phase_len + (ki // dh) * Wph + (kj // dw))
    lp = _round_up(max(n_ph * phase_len, max(taps) + s_pad), _LANE)
    return _Geom(OH, OW, Hph, Wph, n_ph, phase_len, s_valid, s_pad, lp, tuple(taps))


# -------------------------------------------------------- one-time param relayout
def prepare_weight(weight, kernel_size, stride, dtype=jnp.bfloat16):
    """(1,O,C,OH,OW,K2) -> (O, K2*C, S_pad); row = k2*C + c, lane = oh*Wph + ow.

    Done once at parameter-load time; default bf16 feed (f32 accumulation in-kernel).
    """
    _, O, C, OH, OW, K2 = weight.shape
    kh = kw = kernel_size
    dh = dw = stride
    assert K2 == kh * kw
    g = _geometry(OH, OW, kh, kw, dh, dw)
    w = jnp.transpose(weight[0], (0, 4, 1, 2, 3))            # (O, K2, C, OH, OW)
    w = jnp.pad(w, ((0, 0),) * 4 + ((0, g.Wph - OW),))       # row-pad columns -> Wph
    w = w.reshape(O, K2 * C, OH * g.Wph)
    w = jnp.pad(w, ((0, 0), (0, 0), (0, g.s_pad - g.s_valid)))
    return w.astype(dtype)


def prepare_bias(bias, kernel_size, stride):
    """(1,O,OH,OW) -> (O, S_pad) float32, or None."""
    if bias is None:
        return None
    _, O, OH, OW = bias.shape
    g = _geometry(OH, OW, kernel_size, kernel_size, stride, stride)
    b = jnp.pad(bias[0], ((0, 0), (0, 0), (0, g.Wph - OW)))
    b = b.reshape(O, OH * g.Wph)
    b = jnp.pad(b, ((0, 0), (0, g.s_pad - g.s_valid)))
    return b.astype(jnp.float32)


# ----------------------------------------------------------------------- kernel
def _lc2d_kernel(*refs, C, taps, c_chunk, has_bias):
    """x_ref: (1, C, Lp), w_ref: (TO, K2*C, S), [b_ref: (TO, S)], o_ref: (1, TO, S)."""
    if has_bias:
        x_ref, w_ref, b_ref, o_ref = refs
    else:
        x_ref, w_ref, o_ref = refs
        b_ref = None
    _, TO, TS = o_ref.shape

    acc = jnp.zeros((TO, TS), jnp.float32)
    # In-kernel unfold: each kernel tap is a static lane-offset slice of the resident
    # x block; per-tap chunked contraction over C keeps temporaries to a few vregs.
    for k2, off in enumerate(taps):
        for c0 in range(0, C, c_chunk):
            cs = min(c_chunk, C - c0)
            a = x_ref[0, pl.ds(c0, cs), pl.ds(off, TS)].astype(jnp.float32)  # (cs, TS)
            w = w_ref[:, pl.ds(k2 * C + c0, cs), :].astype(jnp.float32)      # (TO, cs, TS)
            acc = acc + jnp.sum(w * a[None, :, :], axis=1)
    if has_bias:
        acc = acc + b_ref[...]
    o_ref[0] = acc.astype(o_ref.dtype)          # single dense (TO, TS) store per step


# --------------------------------------------------------------------- heuristics
def _vmem_limit_bytes():
    cap = None
    try:
        if hasattr(pltpu, "get_tpu_info"):
            cap = getattr(pltpu.get_tpu_info(), "vmem_capacity_bytes", None)
    except Exception:
        cap = None
    if not cap:
        cap = 64 * 1024 * 1024      # conservative fallback = v7x physical VMEM per TC
    return int(min(cap * 0.45, 100 * 1024 * 1024))


def _choose_out_tile(O, per_to_bytes, fixed_bytes, budget):
    """Largest O-tile (multiple of 8 dividing O, or O itself) fitting the budget."""
    cands = sorted({O} | {t for t in range(8, O + 1, 8) if O % t == 0})
    fit = [t for t in cands if fixed_bytes + t * per_to_bytes <= budget]
    # TODO(synk): add an S'-tile grid axis (dynamic lane offsets) for spatial maps
    # too large to fit even the smallest O tile in VMEM.
    return max(fit) if fit else cands[0]


# ------------------------------------------------------------------------ forward
@functools.partial(jax.jit, static_argnames=("kernel_size", "stride"))
def locally_connected_2d(x, w_s, b_s=None, *, kernel_size, stride):
    """x: (N,C,H,W); w_s = prepare_weight(weight,...); b_s = prepare_bias(bias,...)."""
    kh = kw = kernel_size
    dh = dw = stride
    N, C, H, W = x.shape
    OH = (H - kh) // dh + 1
    OW = (W - kw) // dw + 1
    O, CK2, Sp = w_s.shape
    K2 = kh * kw
    assert CK2 == K2 * C, "prepared weight does not match input channels / kernel size"
    g = _geometry(OH, OW, kh, kw, dh, dw)
    assert Sp == g.s_pad, "prepared weight does not match input spatial geometry"

    feed_dtype = w_s.dtype

    # Phase-decomposed, row-padded flat activation (N, C, Lp) ~= 1x activation bytes.
    # For stride == 1 this is just x reshaped to (N, C, H*W) plus lane padding.
    phases = []
    for pi in range(dh):
        for pj in range(dw):
            xp = x[:, :, pi::dh, pj::dw][:, :, :g.Hph, :g.Wph]
            ph, pw = xp.shape[2], xp.shape[3]
            if ph < g.Hph or pw < g.Wph:
                xp = jnp.pad(xp, ((0, 0), (0, 0), (0, g.Hph - ph), (0, g.Wph - pw)))
            phases.append(xp.reshape(N, C, g.phase_len))
    xf = phases[0] if len(phases) == 1 else jnp.concatenate(phases, axis=2)
    xf = jnp.pad(xf, ((0, 0), (0, 0), (0, g.lp - xf.shape[2]))).astype(feed_dtype)

    has_bias = b_s is not None
    w_it = np.dtype(w_s.dtype).itemsize
    x_it = np.dtype(feed_dtype).itemsize
    o_it = np.dtype(x.dtype).itemsize

    vmem_limit = _vmem_limit_bytes()
    per_to = 2 * (CK2 * Sp * w_it + Sp * o_it + (Sp * 4 if has_bias else 0))
    fixed = 2 * C * g.lp * x_it
    TO = _choose_out_tile(O, per_to, fixed, vmem_limit // 2)

    # C-chunk so the broadcast (TO, cs, Sp) product stays within a few dozen vregs.
    c_chunk = max(1, min(C, 32768 // max(1, TO * Sp)))

    kernel = functools.partial(_lc2d_kernel, C=C, taps=g.taps,
                               c_chunk=c_chunk, has_bias=has_bias)

    in_specs = [
        pl.BlockSpec((1, C, g.lp), lambda o, n: (n, 0, 0)),    # x: one batch element
        pl.BlockSpec((TO, CK2, Sp), lambda o, n: (o, 0, 0)),   # weight: per-O tile,
    ]                                                          #   resident across n
    operands = [xf, w_s]
    if has_bias:
        in_specs.append(pl.BlockSpec((TO, Sp), lambda o, n: (o, 0)))
        operands.append(b_s)

    flops = 2 * N * O * K2 * C * Sp
    bytes_accessed = (w_s.size * w_it + (O // TO) * xf.size * x_it
                      + N * O * Sp * o_it + (b_s.size * 4 if has_bias else 0))

    out = pl.pallas_call(
        kernel,
        out_shape=jax.ShapeDtypeStruct((N, O, Sp), x.dtype),
        grid_spec=pltpu.PrefetchScalarGridSpec(
            num_scalar_prefetch=0,
            grid=(O // TO, N),        # o outer (weight fetched once per tile), n inner
            in_specs=in_specs,
            out_specs=pl.BlockSpec((1, TO, Sp), lambda o, n: (n, o, 0)),
        ),
        compiler_params=pltpu.CompilerParams(
            dimension_semantics=("parallel", "parallel"),
            vmem_limit_bytes=vmem_limit,
        ),
        cost_estimate=pl.CostEstimate(
            flops=flops, transcendentals=0, bytes_accessed=bytes_accessed),
    )(*operands)

    # Free relayout: lane-dense row-padded layout -> (N, O, OH, OW).
    out = out[:, :, :g.s_valid].reshape(N, O, OH, g.Wph)[:, :, :, :OW]
    return out


# ---------------------------------------------------------------------- reference
def _reference(x, weight, bias, kernel_size, stride):
    """float64 numpy reference matching the PyTorch forward exactly."""
    x = np.asarray(x, np.float64)
    w = np.asarray(weight, np.float64)
    kh = kw = kernel_size
    N, C, H, W = x.shape
    OH = (H - kh) // stride + 1
    OW = (W - kw) // stride + 1
    cols = []
    for ki in range(kh):
        for kj in range(kw):
            cols.append(x[:, :, ki:ki + stride * OH:stride, kj:kj + stride * OW:stride])
    p = np.stack(cols, axis=-1)                               # (N, C, OH, OW, K2)
    out = np.einsum("ncyxk,ocyxk->noyx", p, w[0])
    if bias is not None:
        out = out + np.asarray(bias, np.float64)
    return out


if __name__ == "__main__":
    # Small deterministic configuration.
    N, C, H, W = 2, 4, 16, 16
    O = 8
    k, s = 3, 1
    OH = (H - k) // s + 1          # 14
    OW = (W - k) // s + 1          # 14
    K2 = k * k

    key = jax.random.PRNGKey(0)
    kx, kw1, kb1, kw2, kb2 = jax.random.split(key, 5)
    x = jax.random.normal(kx, (N, C, H, W), jnp.float32)
    # torch-layout parameters (randn-initialized in the module).
    weight = jax.random.normal(kw1, (1, O, C, OH, OW, K2), jnp.float32)
    bias = jax.random.normal(kb1, (1, O, OH, OW), jnp.float32)

    # ---- f32 parameter feed, with bias (exact-numerics path) ----
    w32 = jax.block_until_ready(prepare_weight(weight, k, s, dtype=jnp.float32))
    b32 = jax.block_until_ready(prepare_bias(bias, k, s))
    out = jax.block_until_ready(
        locally_connected_2d(x, w32, b32, kernel_size=k, stride=s))
    ref = _reference(x, weight, bias, k, s)
    np.testing.assert_allclose(np.asarray(out, np.float64), ref, rtol=1e-4, atol=1e-4)

    # ---- default bf16 parameter/activation feed (f32 accumulation), no bias ----
    wbf = jax.block_until_ready(prepare_weight(weight, k, s))       # bf16 default
    out_bf = jax.block_until_ready(
        locally_connected_2d(x, wbf, None, kernel_size=k, stride=s))
    x_r = np.asarray(x.astype(jnp.bfloat16).astype(jnp.float32))
    w_r = np.asarray(weight.astype(jnp.bfloat16).astype(jnp.float32))
    ref_bf = _reference(x_r, w_r, None, k, s)
    np.testing.assert_allclose(np.asarray(out_bf, np.float64), ref_bf,
                               rtol=2e-3, atol=2e-3)

    # ---- stride > 1 exercises the phase-decomposed layout, bf16 feed, with bias ----
    s2 = 2
    OH2 = (H - k) // s2 + 1        # 7
    OW2 = (W - k) // s2 + 1        # 7
    weight2 = jax.random.normal(kw2, (1, O, C, OH2, OW2, K2), jnp.float32)
    bias2 = jax.random.normal(kb2, (1, O, OH2, OW2), jnp.float32)
    w2 = jax.block_until_ready(prepare_weight(weight2, k, s2))
    b2 = jax.block_until_ready(prepare_bias(bias2, k, s2))
    out2 = jax.block_until_ready(
        locally_connected_2d(x, w2, b2, kernel_size=k, stride=s2))
    w2_r = np.asarray(weight2.astype(jnp.bfloat16).astype(jnp.float32))
    ref2 = _reference(x_r, w2_r, bias2, k, s2)
    np.testing.assert_allclose(np.asarray(out2, np.float64), ref2,
                               rtol=2e-3, atol=2e-3)

    print("KERNEL_OK")
</pallas_src>

<mosaic_0001>
module attributes {stable_mosaic.version = 11 : i64} {
  func.func @_lc2d_kernel(%arg0: i32, %arg1: i32, %arg2: memref<1x4x384xf32, #tpu.memory_space<vmem>>, %arg3: memref<8x36x256xf32, #tpu.memory_space<vmem>>, %arg4: memref<8x256xf32, #tpu.memory_space<vmem>>, %arg5: memref<1x8x256xf32, #tpu.memory_space<vmem>>) attributes {dimension_semantics = [#tpu.dimension_semantics<parallel>, #tpu.dimension_semantics<parallel>], iteration_bounds = array<i64: 1, 2>, scalar_prefetch = 0 : i64, scratch_operands = 0 : i64, tpu.core_type = #tpu.core_type<tc>, window_params = [{transform_indices = @transform_0, window_bounds = array<i64: 1, 4, 384>}, {transform_indices = @transform_1, window_bounds = array<i64: 8, 36, 256>}, {transform_indices = @transform_2, window_bounds = array<i64: 8, 256>}, {transform_indices = @transform_3, window_bounds = array<i64: 1, 8, 256>}]} {
    %cst = arith.constant 0.000000e+00 : f32
    %0 = vector.broadcast %cst : f32 to vector<8x256xf32>
    %c0 = arith.constant 0 : index
    %c0_0 = arith.constant 0 : index
    %c0_1 = arith.constant 0 : index
    %1 = vector.load %arg2[%c0, %c0_0, %c0_1] : memref<1x4x384xf32, #tpu.memory_space<vmem>>, vector<1x4x256xf32>
    %2 = vector.shape_cast %1 : vector<1x4x256xf32> to vector<4x256xf32>
    %c0_2 = arith.constant 0 : index
    %c0_3 = arith.constant 0 : index
    %c0_4 = arith.constant 0 : index
    %3 = vector.load %arg3[%c0_2, %c0_3, %c0_4] : memref<8x36x256xf32, #tpu.memory_space<vmem>>, vector<8x4x256xf32>
    %4 = vector.shape_cast %2 : vector<4x256xf32> to vector<1x4x256xf32>
    %5 = vector.broadcast %4 : vector<1x4x256xf32> to vector<8x4x256xf32>
    %6 = arith.mulf %3, %5 : vector<8x4x256xf32>
    %cst_5 = arith.constant dense<0.000000e+00> : vector<8x256xf32>
    %7 = vector.multi_reduction <add>, %6, %cst_5 [1] : vector<8x4x256xf32> to vector<8x256xf32>
    %8 = arith.addf %0, %7 : vector<8x256xf32>
    %c0_6 = arith.constant 0 : index
    %c0_7 = arith.constant 0 : index
    %c1 = arith.constant 1 : index
    %9 = vector.load %arg2[%c0_6, %c0_7, %c1] : memref<1x4x384xf32, #tpu.memory_space<vmem>>, vector<1x4x256xf32>
    %10 = vector.shape_cast %9 : vector<1x4x256xf32> to vector<4x256xf32>
    %c0_8 = arith.constant 0 : index
    %c4 = arith.constant 4 : index
    %c0_9 = arith.constant 0 : index
    %11 = vector.load %arg3[%c0_8, %c4, %c0_9] : memref<8x36x256xf32, #tpu.memory_space<vmem>>, vector<8x4x256xf32>
    %12 = vector.shape_cast %10 : vector<4x256xf32> to vector<1x4x256xf32>
    %13 = vector.broadcast %12 : vector<1x4x256xf32> to vector<8x4x256xf32>
    %14 = arith.mulf %11, %13 : vector<8x4x256xf32>
    %cst_10 = arith.constant dense<0.000000e+00> : vector<8x256xf32>
    %15 = vector.multi_reduction <add>, %14, %cst_10 [1] : vector<8x4x256xf32> to vector<8x256xf32>
    %16 = arith.addf %8, %15 : vector<8x256xf32>
    %c0_11 = arith.constant 0 : index
    %c0_12 = arith.constant 0 : index
    %c2 = arith.constant 2 : index
    %17 = vector.load %arg2[%c0_11, %c0_12, %c2] : memref<1x4x384xf32, #tpu.memory_space<vmem>>, vector<1x4x256xf32>
    %18 = vector.shape_cast %17 : vector<1x4x256xf32> to vector<4x256xf32>
    %c0_13 = arith.constant 0 : index
    %c8 = arith.constant 8 : index
    %c0_14 = arith.constant 0 : index
    %19 = vector.load %arg3[%c0_13, %c8, %c0_14] : memref<8x36x256xf32, #tpu.memory_space<vmem>>, vector<8x4x256xf32>
    %20 = vector.shape_cast %18 : vector<4x256xf32> to vector<1x4x256xf32>
    %21 = vector.broadcast %20 : vector<1x4x256xf32> to vector<8x4x256xf32>
    %22 = arith.mulf %19, %21 : vector<8x4x256xf32>
    %cst_15 = arith.constant dense<0.000000e+00> : vector<8x256xf32>
    %23 = vector.multi_reduction <add>, %22, %cst_15 [1] : vector<8x4x256xf32> to vector<8x256xf32>
    %24 = arith.addf %16, %23 : vector<8x256xf32>
    %c0_16 = arith.constant 0 : index
    %c0_17 = arith.constant 0 : index
    %c16 = arith.constant 16 : index
    %25 = vector.load %arg2[%c0_16, %c0_17, %c16] : memref<1x4x384xf32, #tpu.memory_space<vmem>>, vector<1x4x256xf32>
    %26 = vector.shape_cast %25 : vector<1x4x256xf32> to vector<4x256xf32>
    %c0_18 = arith.constant 0 : index
    %c12 = arith.constant 12 : index
    %c0_19 = arith.constant 0 : index
    %27 = vector.load %arg3[%c0_18, %c12, %c0_19] : memref<8x36x256xf32, #tpu.memory_space<vmem>>, vector<8x4x256xf32>
    %28 = vector.shape_cast %26 : vector<4x256xf32> to vector<1x4x256xf32>
    %29 = vector.broadcast %28 : vector<1x4x256xf32> to vector<8x4x256xf32>
    %30 = arith.mulf %27, %29 : vector<8x4x256xf32>
    %cst_20 = arith.constant dense<0.000000e+00> : vector<8x256xf32>
    %31 = vector.multi_reduction <add>, %30, %cst_20 [1] : vector<8x4x256xf32> to vector<8x256xf32>
    %32 = arith.addf %24, %31 : vector<8x256xf32>
    %c0_21 = arith.constant 0 : index
    %c0_22 = arith.constant 0 : index
    %c17 = arith.constant 17 : index
    %33 = vector.load %arg2[%c0_21, %c0_22, %c17] : memref<1x4x384xf32, #tpu.memory_space<vmem>>, vector<1x4x256xf32>
    %34 = vector.shape_cast %33 : vector<1x4x256xf32> to vector<4x256xf32>
    %c0_23 = arith.constant 0 : index
    %c16_24 = arith.constant 16 : index
    %c0_25 = arith.constant 0 : index
    %35 = vector.load %arg3[%c0_23, %c16_24, %c0_25] : memref<8x36x256xf32, #tpu.memory_space<vmem>>, vector<8x4x256xf32>
    %36 = vector.shape_cast %34 : vector<4x256xf32> to vector<1x4x256xf32>
    %37 = vector.broadcast %36 : vector<1x4x256xf32> to vector<8x4x256xf32>
    %38 = arith.mulf %35, %37 : vector<8x4x256xf32>
    %cst_26 = arith.constant dense<0.000000e+00> : vector<8x256xf32>
    %39 = vector.multi_reduction <add>, %38, %cst_26 [1] : vector<8x4x256xf32> to vector<8x256xf32>
    %40 = arith.addf %32, %39 : vector<8x256xf32>
    %c0_27 = arith.constant 0 : index
    %c0_28 = arith.constant 0 : index
    %c18 = arith.constant 18 : index
    %41 = vector.load %arg2[%c0_27, %c0_28, %c18] : memref<1x4x384xf32, #tpu.memory_space<vmem>>, vector<1x4x256xf32>
    %42 = vector.shape_cast %41 : vector<1x4x256xf32> to vector<4x256xf32>
    %c0_29 = arith.constant 0 : index
    %c20 = arith.constant 20 : index
    %c0_30 = arith.constant 0 : index
    %43 = vector.load %arg3[%c0_29, %c20, %c0_30] : memref<8x36x256xf32, #tpu.memory_space<vmem>>, vector<8x4x256xf32>
    %44 = vector.shape_cast %42 : vector<4x256xf32> to vector<1x4x256xf32>
    %45 = vector.broadcast %44 : vector<1x4x256xf32> to vector<8x4x256xf32>
    %46 = arith.mulf %43, %45 : vector<8x4x256xf32>
    %cst_31 = arith.constant dense<0.000000e+00> : vector<8x256xf32>
    %47 = vector.multi_reduction <add>, %46, %cst_31 [1] : vector<8x4x256xf32> to vector<8x256xf32>
    %48 = arith.addf %40, %47 : vector<8x256xf32>
    %c0_32 = arith.constant 0 : index
    %c0_33 = arith.constant 0 : index
    %c32 = arith.constant 32 : index
    %49 = vector.load %arg2[%c0_32, %c0_33, %c32] : memref<1x4x384xf32, #tpu.memory_space<vmem>>, vector<1x4x256xf32>
    %50 = vector.shape_cast %49 : vector<1x4x256xf32> to vector<4x256xf32>
    %c0_34 = arith.constant 0 : index
    %c24 = arith.constant 24 : index
    %c0_35 = arith.constant 0 : index
    %51 = vector.load %arg3[%c0_34, %c24, %c0_35] : memref<8x36x256xf32, #tpu.memory_space<vmem>>, vector<8x4x256xf32>
    %52 = vector.shape_cast %50 : vector<4x256xf32> to vector<1x4x256xf32>
    %53 = vector.broadcast %52 : vector<1x4x256xf32> to vector<8x4x256xf32>
    %54 = arith.mulf %51, %53 : vector<8x4x256xf32>
    %cst_36 = arith.constant dense<0.000000e+00> : vector<8x256xf32>
    %55 = vector.multi_reduction <add>, %54, %cst_36 [1] : vector<8x4x256xf32> to vector<8x256xf32>
    %56 = arith.addf %48, %55 : vector<8x256xf32>
    %c0_37 = arith.constant 0 : index
    %c0_38 = arith.constant 0 : index
    %c33 = arith.constant 33 : index
    %57 = vector.load %arg2[%c0_37, %c0_38, %c33] : memref<1x4x384xf32, #tpu.memory_space<vmem>>, vector<1x4x256xf32>
    %58 = vector.shape_cast %57 : vector<1x4x256xf32> to vector<4x256xf32>
    %c0_39 = arith.constant 0 : index
    %c28 = arith.constant 28 : index
    %c0_40 = arith.constant 0 : index
    %59 = vector.load %arg3[%c0_39, %c28, %c0_40] : memref<8x36x256xf32, #tpu.memory_space<vmem>>, vector<8x4x256xf32>
    %60 = vector.shape_cast %58 : vector<4x256xf32> to vector<1x4x256xf32>
    %61 = vector.broadcast %60 : vector<1x4x256xf32> to vector<8x4x256xf32>
    %62 = arith.mulf %59, %61 : vector<8x4x256xf32>
    %cst_41 = arith.constant dense<0.000000e+00> : vector<8x256xf32>
    %63 = vector.multi_reduction <add>, %62, %cst_41 [1] : vector<8x4x256xf32> to vector<8x256xf32>
    %64 = arith.addf %56, %63 : vector<8x256xf32>
    %c0_42 = arith.constant 0 : index
    %c0_43 = arith.constant 0 : index
    %c34 = arith.constant 34 : index
    %65 = vector.load %arg2[%c0_42, %c0_43, %c34] : memref<1x4x384xf32, #tpu.memory_space<vmem>>, vector<1x4x256xf32>
    %66 = vector.shape_cast %65 : vector<1x4x256xf32> to vector<4x256xf32>
    %c0_44 = arith.constant 0 : index
    %c32_45 = arith.constant 32 : index
    %c0_46 = arith.constant 0 : index
    %67 = vector.load %arg3[%c0_44, %c32_45, %c0_46] : memref<8x36x256xf32, #tpu.memory_space<vmem>>, vector<8x4x256xf32>
    %68 = vector.shape_cast %66 : vector<4x256xf32> to vector<1x4x256xf32>
    %69 = vector.broadcast %68 : vector<1x4x256xf32> to vector<8x4x256xf32>
    %70 = arith.mulf %67, %69 : vector<8x4x256xf32>
    %cst_47 = arith.constant dense<0.000000e+00> : vector<8x256xf32>
    %71 = vector.multi_reduction <add>, %70, %cst_47 [1] : vector<8x4x256xf32> to vector<8x256xf32>
    %72 = arith.addf %64, %71 : vector<8x256xf32>
    %c0_48 = arith.constant 0 : index
    %c0_49 = arith.constant 0 : index
    %73 = vector.load %arg4[%c0_48, %c0_49] : memref<8x256xf32, #tpu.memory_space<vmem>>, vector<8x256xf32>
    %74 = arith.addf %72, %73 : vector<8x256xf32>
    %c0_50 = arith.constant 0 : index
    %c0_51 = arith.constant 0 : index
    %c0_52 = arith.constant 0 : index
    %75 = vector.load %arg5[%c0_50, %c0_51, %c0_52] : memref<1x8x256xf32, #tpu.memory_space<vmem>>, vector<1x8x256xf32>
    %76 = vector.shape_cast %75 : vector<1x8x256xf32> to vector<8x256xf32>
    %77 = vector.shape_cast %74 : vector<8x256xf32> to vector<1x8x256xf32>
    tpu.vector_store %arg5[%c0_50, %c0_51, %c0_52], %77 {strides = array<i32>} : memref<1x8x256xf32, #tpu.memory_space<vmem>>, vector<1x8x256xf32>,
    return
  }
  func.func @transform_0(%arg0: i32, %arg1: i32) -> (i32, i32, i32) {
    %c0_i32 = arith.constant 0 : i32
    %c0_i32_0 = arith.constant 0 : i32
    %c0_i32_1 = arith.constant 0 : i32
    return %arg1, %c0_i32, %c0_i32_0 : i32, i32, i32
  }
  func.func @transform_1(%arg0: i32, %arg1: i32) -> (i32, i32, i32) {
    %c0_i32 = arith.constant 0 : i32
    %c0_i32_0 = arith.constant 0 : i32
    %c0_i32_1 = arith.constant 0 : i32
    return %arg0, %c0_i32, %c0_i32_0 : i32, i32, i32
  }
  func.func @transform_2(%arg0: i32, %arg1: i32) -> (i32, i32) {
    %c0_i32 = arith.constant 0 : i32
    %c0_i32_0 = arith.constant 0 : i32
    return %arg0, %c0_i32 : i32, i32
  }
  func.func @transform_3(%arg0: i32, %arg1: i32) -> (i32, i32, i32) {
    %c0_i32 = arith.constant 0 : i32
    %c0_i32_0 = arith.constant 0 : i32
    return %arg1, %arg0, %c0_i32 : i32, i32, i32
  }
}

</mosaic_0001>

<bundles_post_ra>
// kernel: locally_connected_2d.1
= control target key start
LH: loop header
LB: loop body
LE: loop exit
PB: predicated region body
PF: predicated region fallthrough
CT: control target
= control target key end

     0   :  { %s2290_s12 = smov 0   ;;  %s2292_s13 = smov 0   ;;  %s3815_s0 = inlined_call_operand.vmem [shape: f32[2,4,384], index: 0, kind: input, shape index: {}]   ;;  %s3816_s1 = inlined_call_operand.vmem [shape: f32[8,36,256], index: 1, kind: input, shape index: {}]   ;;  %s3817_s2 = inlined_call_operand.vmem [shape: f32[8,256], index: 2, kind: input, shape index: {}]   ;;  %s3818_s3 = inlined_call_operand.vmem [shape: f32[2,8,256], index: 3, kind: output, shape index: {}]  }
   0x1   :  { %s2294_s14 = smov 0  }
   0x2 LB: > { %s22_s15 = sadd.s32 1, %s2256_s13  ;;  %p2195_p0 = scmp.ge.s32.totalorder %s2260_s14, 1  ;;  %s2260_s14 = sphi %s2294_s14, %s13_s14   ;;  %s2256_s13 = sphi %s2292_s13, %s3848_s13   ;;  %s2252_s12 = sphi %s2290_s12, %s3847_s12  }
   0x3   : > { %p23_p1 = scmp.ge.s32.totalorder %s22_s15, 2  ;;  %p173_p2 = scmp.lt.s32.totalorder %s2260_s14, 3 }
   0x5   : > { %s3850_s15 = smov (%p23_p1, %s22_s15), 0  ;;  %p174_p3 = pnand %p2195_p0, %p173_p2 }
   0x7   : > { %177 = sbr.rel (%p174_p3) target bundleno = 470 (0x1d6), region = 32 }
   0xe   : > { %p212_p4 = scmp.lt.s32.totalorder %s2252_s12, 1  ;;  %s2262_s20 = smov 126   ;;  %v239_v5 = vld [vmem:[%s3816_s1] sm:$0xf]  ;;  %v241_v6 = vld [vmem:[%s3816_s1 + $0x50] sm:$0xf] }
   0xf   : > { %s2263_s21 = smov 127   ;;  %s2264_s22 = smov 112   ;;  %v243_v7 = vld [vmem:[%s3816_s1 + $0xa0] sm:$0xf]  ;;  %v245_v8 = vld [vmem:[%s3816_s1 + $0xf0] sm:$0xf] }
  0x10   : > { %s3852_s12 = smov (!%p212_p4, %s2252_s12), 1  ;;  %s2265_s23 = smov 111   ;;  %v247_v9 = vld [vmem:[%s3816_s1 + $0x140] sm:$0xf]  ;;  %v249_v10 = vld [vmem:[%s3816_s1 + $0x190] sm:$0xf] }
  0x11   : > { %s2202_s16 = smul.u32 12, %s3852_s12  ;;  %s2266_s24 = smov 110   ;;  %v251_v11 = vld [vmem:[%s3816_s1 + $0x1e0] sm:$0xf]  ;;  %v253_v15 = vld [vmem:[%s3816_s1 + $0x230] sm:$0xf] }
  0x12   : > { %s2267_s25 = smov 96   ;;  %s2268_s26 = smov 95   ;;  %vm274_vm0 = vcmask 1043456   ;;  %v240_v29 = vld [vmem:[%s3816_s1 + $0x8] sm:$0xf]  ;;  %vm431_vm1 = vcmask 1039360  }
  0x13   : > { %s216_s19 = scalar_lea.vmem %s3815_s0, %s2202_s16  ;;  %s2269_s27 = smov 94   ;;  %v242_v34 = vld [vmem:[%s3816_s1 + $0x58] sm:$0xf]  ;;  %v244_v35 = vld [vmem:[%s3816_s1 + $0xa8] sm:$0xf]  ;;  %vm651_vm2 = vcmask 1031168  }
  0x14   : > { %v403_v0 = vld [vmem:[%s216_s19] sm:$0xff]  ;;  %v404_v2 = vld [vmem:[%s216_s19 + $0x8] sm:$0xf]  ;;  %v246_v36 = vld [vmem:[%s3816_s1 + $0xf8] sm:$0xf]  ;;  %vm822_vm3 = vcmask 916480  }
  0x15   : > { %645 = vrot.lane.b32.xlu1 %v403_v0, %s2262_s20  ;;  %427 = vrot.lane.b32.xlu0 %v403_v0, %s2263_s21  ;;  %v423_v1 = vcombine.low %v403_v0, %v403_v0  ;;  %v424_v3 = vcombine.low %v404_v2, %v404_v2  ;;  %v2314_v4 = vcombine.high %v403_v0, %v403_v0  ;;  %v248_v37 = vld [vmem:[%s3816_s1 + $0x148] sm:$0xf]  ;;  %v250_v39 = vld [vmem:[%s3816_s1 + $0x198] sm:$0xf]  ;;  %vm1041_vm4 = vcmask 908288  }
  0x16   : > { %v258_v12 = vmul.f32 %v403_v0, %v239_v5  ;;  %v260_v13 = vmul.f32 %v403_v0, %v241_v6  ;;  %v262_v14 = vmul.f32 %v403_v0, %v243_v7  ;;  %v264_v16 = vmul.f32 %v403_v0, %v245_v8  ;;  %v252_v40 = vld [vmem:[%s3816_s1 + $0x1e8] sm:$0xf]  ;;  %v254_v45 = vld [vmem:[%s3816_s1 + $0x238] sm:$0xf] }
  0x17   : > { %v266_v17 = vmul.f32 %v403_v0, %v247_v9  ;;  %v268_v18 = vmul.f32 %v403_v0, %v249_v10  ;;  %v270_v19 = vmul.f32 %v403_v0, %v251_v11  ;;  %v272_v20 = vmul.f32 %v403_v0, %v253_v15 }
  0x18   : > { %v275_v21 = vsel %vm274_vm0, %v258_v12, 0.0  ;;  %v289_v22 = vsel %vm274_vm0, %v260_v13, 0.0  ;;  %v303_v23 = vsel %vm274_vm0, %v262_v14, 0.0  ;;  %v317_v24 = vsel %vm274_vm0, %v264_v16, 0.0 }
  0x19   : > { %649 = vrot.lane.b32.xlu1 %v404_v2, %s2262_s20  ;;  %425 = vrot.lane.b32.xlu0 %v423_v1, %s2263_s21  ;;  %v276_v25 = vrot.slane %v275_v21, 4  ;;  %v290_v26 = vrot.slane %v289_v22, 4  ;;  %v304_v27 = vrot.slane %v303_v23, 4  ;;  %v331_v28 = vsel %vm274_vm0, %v266_v17, 0.0 }
  0x1a   : > { %v318_v30 = vrot.slane %v317_v24, 4  ;;  %v345_v31 = vsel %vm274_vm0, %v268_v18, 0.0  ;;  %v359_v32 = vsel %vm274_vm0, %v270_v19, 0.0  ;;  %v373_v33 = vsel %vm274_vm0, %v272_v20, 0.0 }
  0x1b   : > { %v332_v38 = vrot.slane %v331_v28, 4  ;;  %v277_v41 = vadd.f32 %v276_v25, %v275_v21  ;;  %v346_v42 = vrot.slane %v345_v31, 4  ;;  %v360_v43 = vrot.slane %v359_v32, 4 }
  0x1c   : > { %v374_v44 = vrot.slane %v373_v33, 4  ;;  %v291_v46 = vadd.f32 %v290_v26, %v289_v22  ;;  %v305_v47 = vadd.f32 %v304_v27, %v303_v23  ;;  %v319_v48 = vadd.f32 %v318_v30, %v317_v24 }
  0x1d   : > { %429 = vrot.lane.b32.xlu1 %v424_v3, %s2263_s21  ;;  %647 = vrot.lane.b32.xlu0 %v2314_v4, %s2262_s20  ;;  %v259_v49 = vmul.f32 %v2314_v4, %v240_v29  ;;  %v261_v50 = vmul.f32 %v2314_v4, %v242_v34  ;;  %v263_v51 = vmul.f32 %v2314_v4, %v244_v35  ;;  %v278_v58 = vrot.slane %v277_v41, 2  ;;  %s2201_s21 = sshll.u32 %s3852_s12, 4 }
  0x1e   : > { %v265_v52 = vmul.f32 %v2314_v4, %v246_v36  ;;  %v267_v53 = vmul.f32 %v2314_v4, %v248_v37  ;;  %v333_v54 = vadd.f32 %v332_v38, %v331_v28  ;;  %v269_v55 = vmul.f32 %v2314_v4, %v250_v39 }
  0x1f   : > { %v271_v56 = vmul.f32 %v2314_v4, %v252_v40  ;;  %v273_v57 = vmul.f32 %v2314_v4, %v254_v45  ;;  %v347_v59 = vadd.f32 %v346_v42, %v345_v31  ;;  %v361_v60 = vadd.f32 %v360_v43, %v359_v32 }
  0x20   : > { %v375_v61 = vadd.f32 %v374_v44, %v373_v33  ;;  %v292_v62 = vrot.slane %v291_v46, 2  ;;  %v306_v63 = vrot.slane %v305_v47, 2  ;;  %v324_v5 = vsel %vm274_vm0, %v265_v52, 0.0 }
  0x21   : > { %818 = vrot.lane.b32.xlu1 %v403_v0, %s2264_s22  ;;  %816 = vrot.lane.b32.xlu0 %v423_v1, %s2264_s22  ;;  %v338_v6 = vsel %vm274_vm0, %v267_v53, 0.0  ;;  %v334_v7 = vrot.slane %v333_v54, 2  ;;  %v366_v8 = vsel %vm274_vm0, %v271_v56, 0.0  ;;  %v380_v9 = vsel %vm274_vm0, %v273_v57, 0.0  ;;  %v407_v56 = vld [vmem:[%s3816_s1 + $0x50] sm:$0xf0] }
  0x22   : > { %v348_v10 = vrot.slane %v347_v59, 2  ;;  %v362_v11 = vrot.slane %v361_v60, 2  ;;  %v376_v12 = vrot.slane %v375_v61, 2  ;;  %v325_v16 = vrot.slane %v324_v5, 4 }
  0x23   : > { %v339_v17 = vrot.slane %v338_v6, 4  ;;  %v279_v18 = vadd.f32 %v278_v58, %v277_v41  ;;  %v367_v20 = vrot.slane %v366_v8, 4  ;;  %v381_v21 = vrot.slane %v380_v9, 4 }
  0x24   : > { %v293_v22 = vadd.f32 %v292_v62, %v291_v46  ;;  %v307_v23 = vadd.f32 %v306_v63, %v305_v47  ;;  %v335_v25 = vadd.f32 %v334_v7, %v333_v54  ;;  %v349_v26 = vadd.f32 %v348_v10, %v347_v59  ;;  %v411_v62 = vld [vmem:[%s3816_s1 + $0xf0] sm:$0xf0]  ;;  %v413_v63 = vld [vmem:[%s3816_s1 + $0x140] sm:$0xf0] }
  0x25   : > { %1035 = vrot.lane.b32.xlu1 %v403_v0, %s2265_s23  ;;  %820 = vrot.lane.b32.xlu0 %v424_v3, %s2264_s22  ;;  %v363_v27 = vadd.f32 %v362_v11, %v361_v60  ;;  %v377_v28 = vadd.f32 %v376_v12, %v375_v61  ;;  %v326_v32 = vadd.f32 %v325_v16, %v324_v5  ;;  %v280_v34 = vrot.slane %v279_v18, 1  ;;  %v409_v61 = vld [vmem:[%s3816_s1 + $0xa0] sm:$0xf0]  ;;  %v415_v5 = vld [vmem:[%s3816_s1 + $0x190] sm:$0xf0] }
  0x26   : > { %v340_v33 = vadd.f32 %v339_v17, %v338_v6  ;;  %v368_v36 = vadd.f32 %v367_v20, %v366_v8  ;;  %v382_v37 = vadd.f32 %v381_v21, %v380_v9  ;;  %v294_v38 = vrot.slane %v293_v22, 1  ;;  %v417_v6 = vld [vmem:[%s3816_s1 + $0x1e0] sm:$0xf0]  ;;  %v419_v7 = vld [vmem:[%s3816_s1 + $0x230] sm:$0xf0] }
  0x27   : > { %v308_v39 = vrot.slane %v307_v23, 1  ;;  %v336_v41 = vrot.slane %v335_v25, 1  ;;  %v350_v42 = vrot.slane %v349_v26, 1  ;;  %v364_v43 = vrot.slane %v363_v27, 1 }
  0x28   : > { %v378_v44 = vrot.slane %v377_v28, 1  ;;  %v369_v53 = vrot.slane %v368_v36, 2  ;;  %v383_v54 = vrot.slane %v382_v37, 2  ;;  %v2402_v57 = vadd.f32 %v294_v38, %v293_v22 }
  0x29   : > { %1039 = vrot.lane.b32.xlu1 %v404_v2, %s2265_s23  ;;  %1037 = vrot.lane.b32.xlu0 %v2314_v4, %s2265_s23  ;;  %v2404_v58 = vadd.f32 %v308_v39, %v307_v23  ;;  %v2408_v60 = vadd.f32 %v336_v41, %v335_v25  ;;  %vm1212_vm5 = vcmask 900096   ;;  %vm1431_vm6 = vcmask 785408   ;;  %s237_s23 = scalar_lea.vmem %s3818_s3, %s2201_s21 }
  0x2a   : > { %vm1602_vm7 = vcmask 777216   ;;  %vm1821_vm8 = vcmask 769024   ;;  %vm2037_vm9 = vcmask 1041409   ;;  %vm2040_vm10 = vcmask 1042434  }
  0x2b   : > { %vm2043_vm11 = vcmask 1043459   ;;  %vm2046_vm12 = vcmask 1044484   ;;  %vm2049_vm13 = vcmask 1045509   ;;  %vm2052_vm14 = vcmask 1046534  }
  0x2c   : > { %vm2055_vm15 = vcmask 1047559  }
  0x2d   : > { %1208 = vrot.lane.b32.xlu1 %v403_v0, %s2266_s24  ;;  %1206 = vrot.lane.b32.xlu0 %v423_v1, %s2266_s24 }
  0x31   : > { %1425 = vrot.lane.b32.xlu1 %v403_v0, %s2267_s25  ;;  %1210 = vrot.lane.b32.xlu0 %v424_v3, %s2266_s24 }
  0x35   : > { %1429 = vrot.lane.b32.xlu1 %v404_v2, %s2267_s25  ;;  %1427 = vrot.lane.b32.xlu0 %v2314_v4, %s2267_s25 }
  0x39   : > { %1598 = vrot.lane.b32.xlu1 %v403_v0, %s2268_s26  ;;  %1596 = vrot.lane.b32.xlu0 %v423_v1, %s2268_s26  ;;  %v282_v1 = vsel %vm274_vm0, %v259_v49, 0.0  ;;  %v327_v49 = vrot.slane %v326_v32, 2 }
  0x3a   : > { %v283_v13 = vrot.slane %v282_v1, 4 }
  0x3b   : > { %v2440_v10 = vadd.f32 %v327_v49, %v326_v32 }
  0x3c   : > { %v284_v29 = vadd.f32 %v283_v13, %v282_v1  ;;  %v2421_v1 = vadd.f32 %v364_v43, %v363_v27 }
  0x3d   : > { %1815 = vrot.lane.b32.xlu1 %v403_v0, %s2269_s27  ;;  %1600 = vrot.lane.b32.xlu0 %v424_v3, %s2268_s26  ;;  %v320_v0 = vrot.slane %v319_v48, 2  ;;  %v310_v3 = vsel %vm274_vm0, %v263_v51, 0.0  ;;  %v2394_v51 = vadd.f32 %v280_v34, %v279_v18 }
  0x3e   : > { %v311_v15 = vrot.slane %v310_v3, 4  ;;  %v285_v45 = vrot.slane %v284_v29, 2 }
  0x3f   : > { %v321_v24 = vadd.f32 %v320_v0, %v319_v48  ;;  %v2419_v0 = vadd.f32 %v350_v42, %v349_v26 }
  0x40   : > { %v312_v31 = vadd.f32 %v311_v15, %v310_v3  ;;  %v2425_v3 = vadd.f32 %v285_v45, %v284_v29  ;;  %v2450_v15 = vadd.f32 %v383_v54, %v382_v37 }
  0x41   : > { %1819 = vrot.lane.b32.xlu1 %v404_v2, %s2269_s27  ;;  %1817 = vrot.lane.b32.xlu0 %v2314_v4, %s2269_s27  ;;  %v296_v2 = vsel %vm274_vm0, %v261_v50, 0.0  ;;  %v352_v4 = vsel %vm274_vm0, %v269_v55, 0.0  ;;  %v322_v40 = vrot.slane %v321_v24, 1  ;;  %v341_v50 = vrot.slane %v340_v33, 2  ;;  %v405_v55 = vld [vmem:[%s3816_s1] sm:$0xf0] }
  0x42   : > { %v297_v14 = vrot.slane %v296_v2, 4  ;;  %v353_v19 = vrot.slane %v352_v4, 4  ;;  %v313_v48 = vrot.slane %v312_v31, 2 }
  0x43   : > { %v2406_v59 = vadd.f32 %v322_v40, %v321_v24  ;;  %v2442_v11 = vadd.f32 %v341_v50, %v340_v33 }
  0x44   : > { %v298_v30 = vadd.f32 %v297_v14, %v296_v2  ;;  %v354_v35 = vadd.f32 %v353_v19, %v352_v4  ;;  %v2423_v2 = vadd.f32 %v378_v44, %v377_v28  ;;  %v2438_v9 = vadd.f32 %v313_v48, %v312_v31 }
  0x45   : > { %v2448_v14 = vadd.f32 %v369_v53, %v368_v36 }
  0x46   : > { %v299_v47 = vrot.slane %v298_v30, 2  ;;  %v355_v52 = vrot.slane %v354_v35, 2 }
  0x48   : > { %v2436_v8 = vadd.f32 %v299_v47, %v298_v30  ;;  %v2446_v13 = vadd.f32 %v355_v52, %v354_v35 }
  0x87   : > { %v2392_v46 = vpop.permute.xlu0 %427  ;;  %v2452_v32 = vpop.permute.xlu1 %645 }
  0x8b   : > { %v426_v4 = vpop.permute.xlu0 %425 }
  0x8c   : > { %v432_v12 = vsel %vm431_vm1, %v426_v4, %v2392_v46 }
  0x8d   : > { %v436_v16 = vmul.f32 %v432_v12, %v405_v55  ;;  %v438_v17 = vmul.f32 %v432_v12, %v407_v56  ;;  %v440_v18 = vmul.f32 %v432_v12, %v409_v61  ;;  %v442_v19 = vmul.f32 %v432_v12, %v411_v62 }
  0x8e   : > { %v444_v20 = vmul.f32 %v432_v12, %v413_v63  ;;  %v446_v21 = vmul.f32 %v432_v12, %v415_v5  ;;  %v448_v22 = vmul.f32 %v432_v12, %v417_v6  ;;  %v450_v23 = vmul.f32 %v432_v12, %v419_v7  ;;  %v2462_v63 = vpop.permute.xlu1 %649 }
  0x8f   : > { %v468_v24 = vrot.slane %v436_v16, 4  ;;  %v470_v25 = vrot.slane %v438_v17, 4  ;;  %v472_v26 = vrot.slane %v440_v18, 4  ;;  %v474_v27 = vrot.slane %v442_v19, 4 }
  0x90   : > { %v476_v28 = vrot.slane %v444_v20, 4  ;;  %v478_v29 = vrot.slane %v446_v21, 4  ;;  %v480_v30 = vrot.slane %v448_v22, 4  ;;  %v482_v31 = vrot.slane %v450_v23, 4 }
  0x91   : > { %v500_v33 = vsel %vm274_vm0, %v468_v24, 0.0  ;;  %v514_v34 = vsel %vm274_vm0, %v470_v25, 0.0  ;;  %v528_v35 = vsel %vm274_vm0, %v472_v26, 0.0  ;;  %v542_v36 = vsel %vm274_vm0, %v474_v27, 0.0 }
  0x92   : > { %v501_v37 = vrot.slane %v500_v33, 4  ;;  %v515_v38 = vrot.slane %v514_v34, 4  ;;  %v529_v39 = vrot.slane %v528_v35, 4  ;;  %v543_v40 = vrot.slane %v542_v36, 4 }
  0x93   : > { %v556_v41 = vsel %vm274_vm0, %v476_v28, 0.0  ;;  %v570_v42 = vsel %vm274_vm0, %v478_v29, 0.0  ;;  %v584_v43 = vsel %vm274_vm0, %v480_v30, 0.0  ;;  %v598_v44 = vsel %vm274_vm0, %v482_v31, 0.0 }
  0x94   : > { %v502_v45 = vadd.f32 %v501_v37, %v500_v33  ;;  %v516_v47 = vadd.f32 %v515_v38, %v514_v34  ;;  %v530_v48 = vadd.f32 %v529_v39, %v528_v35  ;;  %v544_v49 = vadd.f32 %v543_v40, %v542_v36  ;;  %v430_v40 = vpop.permute.xlu1 %429 }
  0x95   : > { %v557_v50 = vrot.slane %v556_v41, 4  ;;  %v571_v52 = vrot.slane %v570_v42, 4  ;;  %v585_v53 = vrot.slane %v584_v43, 4  ;;  %v599_v54 = vrot.slane %v598_v44, 4 }
  0x96   : > { %v503_v55 = vrot.slane %v502_v45, 2  ;;  %v517_v56 = vrot.slane %v516_v47, 2  ;;  %v531_v61 = vrot.slane %v530_v48, 2  ;;  %v545_v62 = vrot.slane %v544_v49, 2 }
  0x97   : > { %v558_v5 = vadd.f32 %v557_v50, %v556_v41  ;;  %v572_v6 = vadd.f32 %v571_v52, %v570_v42  ;;  %v586_v7 = vadd.f32 %v585_v53, %v584_v43  ;;  %v600_v4 = vadd.f32 %v599_v54, %v598_v44  ;;  %v406_v41 = vld [vmem:[%s3816_s1 + $0x8] sm:$0xf0]  ;;  %v408_v42 = vld [vmem:[%s3816_s1 + $0x58] sm:$0xf0] }
  0x98   : > { %v504_v12 = vadd.f32 %v503_v55, %v502_v45  ;;  %v518_v16 = vadd.f32 %v517_v56, %v516_v47  ;;  %v532_v17 = vadd.f32 %v531_v61, %v530_v48  ;;  %v287_v18 = vrot.slane %v2425_v3, 1  ;;  %v416_v54 = vld [vmem:[%s3816_s1 + $0x198] sm:$0xf0]  ;;  %v418_v55 = vld [vmem:[%s3816_s1 + $0x1e8] sm:$0xf0] }
  0x99   : > { %v559_v19 = vrot.slane %v558_v5, 2  ;;  %v573_v20 = vrot.slane %v572_v6, 2  ;;  %v587_v21 = vrot.slane %v586_v7, 2  ;;  %v601_v22 = vrot.slane %v600_v4, 2 }
  0x9a   : > { %v301_v23 = vrot.slane %v2436_v8, 1  ;;  %v315_v24 = vrot.slane %v2438_v9, 1  ;;  %v329_v25 = vrot.slane %v2440_v10, 1  ;;  %v343_v26 = vrot.slane %v2442_v11, 1 }
  0x9b   : > { %v2469_v27 = vadd.f32 %v545_v62, %v544_v49  ;;  %v357_v28 = vrot.slane %v2446_v13, 1  ;;  %v371_v29 = vrot.slane %v2448_v14, 1  ;;  %v385_v30 = vrot.slane %v2450_v15, 1  ;;  %v412_v49 = vld [vmem:[%s3816_s1 + $0xf8] sm:$0xf0] }
  0x9c   : > { %v505_v31 = vrot.slane %v504_v12, 1  ;;  %v519_v33 = vrot.slane %v518_v16, 1  ;;  %v533_v34 = vrot.slane %v532_v17, 1  ;;  %v2475_v35 = vadd.f32 %v287_v18, %v2425_v3  ;;  %v410_v3 = vld [vmem:[%s3816_s1 + $0xa8] sm:$0xf0] }
  0x9d   : > { %v2477_v36 = vadd.f32 %v559_v19, %v558_v5  ;;  %v2479_v37 = vadd.f32 %v573_v20, %v572_v6  ;;  %v2481_v38 = vadd.f32 %v587_v21, %v586_v7  ;;  %v2483_v39 = vadd.f32 %v601_v22, %v600_v4 }
  0x9e   : > { %v2495_v43 = vadd.f32 %v301_v23, %v2436_v8  ;;  %v2498_v44 = vadd.f32 %v315_v24, %v2438_v9  ;;  %v2501_v45 = vadd.f32 %v329_v25, %v2440_v10  ;;  %v2504_v47 = vadd.f32 %v343_v26, %v2442_v11  ;;  %v414_v8 = vld [vmem:[%s3816_s1 + $0x148] sm:$0xf0] }
  0x9f   : > { %v547_v48 = vrot.slane %v2469_v27, 1  ;;  %v2514_v50 = vadd.f32 %v357_v28, %v2446_v13  ;;  %v2517_v9 = vadd.f32 %v371_v29, %v2448_v14  ;;  %v2520_v10 = vadd.f32 %v385_v30, %v2450_v15  ;;  %v420_v13 = vld [vmem:[%s3816_s1 + $0x238] sm:$0xf0] }
  0xa0   : > { %v506_v11 = vadd.f32 %v505_v31, %v504_v12  ;;  %v520_v52 = vadd.f32 %v519_v33, %v518_v16  ;;  %v534_v53 = vadd.f32 %v533_v34, %v532_v17  ;;  %v433_v14 = vsel %vm431_vm1, %v2392_v46, %v430_v40 }
  0xa1   : > { %v561_v15 = vrot.slane %v2477_v36, 1  ;;  %v575_v56 = vrot.slane %v2479_v37, 1  ;;  %v589_v61 = vrot.slane %v2481_v38, 1  ;;  %v603_v62 = vrot.slane %v2483_v39, 1 }
  0xa2   : > { %v437_v5 = vmul.f32 %v433_v14, %v406_v41  ;;  %v439_v6 = vmul.f32 %v433_v14, %v408_v42  ;;  %v441_v7 = vmul.f32 %v433_v14, %v410_v3  ;;  %v443_v4 = vmul.f32 %v433_v14, %v412_v49 }
  0xa3   : > { %v445_v12 = vmul.f32 %v433_v14, %v414_v8  ;;  %v447_v16 = vmul.f32 %v433_v14, %v416_v54  ;;  %v449_v17 = vmul.f32 %v433_v14, %v418_v55  ;;  %v451_v18 = vmul.f32 %v433_v14, %v420_v13  ;;  %v648_v14 = vpop.permute.xlu0 %647 }
  0xa4   : > { %v469_v19 = vrot.slane %v437_v5, 4  ;;  %v471_v20 = vrot.slane %v439_v6, 4  ;;  %v473_v21 = vrot.slane %v441_v7, 4  ;;  %v475_v46 = vrot.slane %v443_v4, 4 }
  0xa5   : > { %v477_v22 = vrot.slane %v445_v12, 4  ;;  %v479_v23 = vrot.slane %v447_v16, 4  ;;  %v481_v24 = vrot.slane %v449_v17, 4  ;;  %v483_v25 = vrot.slane %v451_v18, 4 }
  0xa6   : > { %v507_v26 = vsel %vm274_vm0, %v469_v19, 0.0  ;;  %v521_v28 = vsel %vm274_vm0, %v471_v20, 0.0  ;;  %v535_v29 = vsel %vm274_vm0, %v473_v21, 0.0  ;;  %v549_v30 = vsel %vm274_vm0, %v475_v46, 0.0 }
  0xa7   : > { %v508_v31 = vrot.slane %v507_v26, 4  ;;  %v522_v33 = vrot.slane %v521_v28, 4  ;;  %v536_v34 = vrot.slane %v535_v29, 4  ;;  %v550_v40 = vrot.slane %v549_v30, 4 }
  0xa8   : > { %v563_v41 = vsel %vm274_vm0, %v477_v22, 0.0  ;;  %v577_v42 = vsel %vm274_vm0, %v479_v23, 0.0  ;;  %v591_v3 = vsel %vm274_vm0, %v481_v24, 0.0  ;;  %v605_v49 = vsel %vm274_vm0, %v483_v25, 0.0 }
  0xa9   : > { %v509_v8 = vadd.f32 %v508_v31, %v507_v26  ;;  %v523_v54 = vadd.f32 %v522_v33, %v521_v28  ;;  %v537_v55 = vadd.f32 %v536_v34, %v535_v29  ;;  %v551_v13 = vadd.f32 %v550_v40, %v549_v30 }
  0xaa   : > { %v564_v5 = vrot.slane %v563_v41, 4  ;;  %v578_v6 = vrot.slane %v577_v42, 4  ;;  %v592_v7 = vrot.slane %v591_v3, 4  ;;  %v606_v4 = vrot.slane %v605_v49, 4 }
  0xab   : > { %v510_v12 = vrot.slane %v509_v8, 2  ;;  %v524_v16 = vrot.slane %v523_v54, 2  ;;  %v538_v17 = vrot.slane %v537_v55, 2  ;;  %v552_v18 = vrot.slane %v551_v13, 2 }
  0xac   : > { %v565_v19 = vadd.f32 %v564_v5, %v563_v41  ;;  %v579_v20 = vadd.f32 %v578_v6, %v577_v42  ;;  %v593_v21 = vadd.f32 %v592_v7, %v591_v3  ;;  %v607_v46 = vadd.f32 %v606_v4, %v605_v49  ;;  %v2557_v41 = vpop.permute.xlu1 %818 }
  0xad   : > { %v548_v22 = vadd.f32 %v547_v48, %v2469_v27  ;;  %v2549_v23 = vadd.f32 %v506_v11, %v2394_v51  ;;  %v2552_v24 = vadd.f32 %v520_v52, %v2402_v57  ;;  %v2555_v25 = vadd.f32 %v534_v53, %v2404_v58  ;;  %v817_v27 = vpop.permute.xlu0 %816 }
  0xae   : > { %v566_v26 = vrot.slane %v565_v19, 2  ;;  %v580_v28 = vrot.slane %v579_v20, 2  ;;  %v594_v29 = vrot.slane %v593_v21, 2  ;;  %v608_v30 = vrot.slane %v607_v46, 2 }
  0xaf   : > { %v511_v31 = vadd.f32 %v510_v12, %v509_v8  ;;  %v525_v33 = vadd.f32 %v524_v16, %v523_v54  ;;  %v539_v34 = vadd.f32 %v538_v17, %v537_v55  ;;  %v553_v40 = vadd.f32 %v552_v18, %v551_v13  ;;  %v631_v8 = vld [vmem:[%s3816_s1 + $0x68] sm:$0xf]  ;;  %v632_v13 = vld [vmem:[%s3816_s1 + $0xb0] sm:$0xf] }
  0xb0   : > { %v562_v51 = vadd.f32 %v561_v15, %v2477_v36  ;;  %v576_v57 = vadd.f32 %v575_v56, %v2479_v37  ;;  %v590_v58 = vadd.f32 %v589_v61, %v2481_v38  ;;  %v604_v48 = vadd.f32 %v603_v62, %v2483_v39  ;;  %v628_v36 = vld [vmem:[%s3816_s1 + $0x10] sm:$0xf]  ;;  %v629_v37 = vld [vmem:[%s3816_s1 + $0x18] sm:$0xf]  ;;  %v630_v38 = vld [vmem:[%s3816_s1 + $0x60] sm:$0xf] }
  0xb1   : > { %v567_v11 = vadd.f32 %v566_v26, %v565_v19  ;;  %v581_v52 = vadd.f32 %v580_v28, %v579_v20  ;;  %v595_v53 = vadd.f32 %v594_v29, %v593_v21  ;;  %v609_v42 = vadd.f32 %v608_v30, %v607_v46 }
  0xb2   : > { %v2572_v3 = vadd.f32 %v548_v22, %v2406_v59  ;;  %v2585_v39 = vsel %vm651_vm2, %v2452_v32, %v648_v14  ;;  %v2589_v59 = vsel %vm651_vm2, %v648_v14, %v2462_v63  ;;  %v2593_v15 = vsel %vm822_vm3, %v817_v27, %v2557_v41  ;;  %v633_v14 = vld [vmem:[%s3816_s1 + $0xb8] sm:$0xf] }
  0xb3   : > { %v512_v56 = vrot.slane %v511_v31, 1  ;;  %v526_v61 = vrot.slane %v525_v33, 1  ;;  %v540_v62 = vrot.slane %v539_v34, 1  ;;  %v554_v49 = vrot.slane %v553_v40, 1 }
  0xb4   : > { %v2599_v54 = vadd.f32 %v562_v51, %v2408_v60  ;;  %v2602_v32 = vadd.f32 %v576_v57, %v2419_v0  ;;  %v2605_v63 = vadd.f32 %v590_v58, %v2421_v1  ;;  %v2608_v55 = vadd.f32 %v604_v48, %v2423_v2  ;;  %v634_v60 = vld [vmem:[%s3816_s1 + $0x100] sm:$0xf]  ;;  %v635_v2 = vld [vmem:[%s3816_s1 + $0x108] sm:$0xf] }
  0xb5   : > { %v568_v0 = vrot.slane %v567_v11, 1  ;;  %v582_v5 = vrot.slane %v581_v52, 1  ;;  %v596_v6 = vrot.slane %v595_v53, 1  ;;  %v610_v1 = vrot.slane %v609_v42, 1 }
  0xb6   : > { %v656_v7 = vmul.f32 %v2585_v39, %v628_v36  ;;  %v657_v4 = vmul.f32 %v2589_v59, %v629_v37  ;;  %v658_v12 = vmul.f32 %v2585_v39, %v630_v38  ;;  %v659_v16 = vmul.f32 %v2589_v59, %v631_v8 }
  0xb7   : > { %v513_v17 = vadd.f32 %v512_v56, %v511_v31  ;;  %v527_v18 = vadd.f32 %v526_v61, %v525_v33  ;;  %v541_v19 = vadd.f32 %v540_v62, %v539_v34  ;;  %v555_v20 = vadd.f32 %v554_v49, %v553_v40 }
  0xb8   : > { %v660_v21 = vmul.f32 %v2585_v39, %v632_v13  ;;  %v661_v46 = vmul.f32 %v2589_v59, %v633_v14  ;;  %v662_v22 = vmul.f32 %v2585_v39, %v634_v60  ;;  %v663_v26 = vmul.f32 %v2589_v59, %v635_v2 }
  0xb9   : > { %v569_v28 = vadd.f32 %v568_v0, %v567_v11  ;;  %v583_v29 = vadd.f32 %v582_v5, %v581_v52  ;;  %v597_v30 = vadd.f32 %v596_v6, %v595_v53  ;;  %v611_v27 = vadd.f32 %v610_v1, %v609_v42  ;;  %v636_v5 = vld [vmem:[%s3816_s1 + $0x150] sm:$0xf]  ;;  %v637_v6 = vld [vmem:[%s3816_s1 + $0x158] sm:$0xf] }
  0xba   : > { %v672_v51 = vsel %vm274_vm0, %v656_v7, 0.0  ;;  %v679_v57 = vsel %vm274_vm0, %v657_v4, 0.0  ;;  %v686_v31 = vsel %vm274_vm0, %v658_v12, 0.0  ;;  %v693_v33 = vsel %vm274_vm0, %v659_v16, 0.0 }
  0xbb   : > { %v673_v34 = vrot.slane %v672_v51, 4  ;;  %v680_v40 = vrot.slane %v679_v57, 4  ;;  %v687_v58 = vrot.slane %v686_v31, 4  ;;  %v694_v48 = vrot.slane %v693_v33, 4 }
  0xbc   : > { %v700_v36 = vsel %vm274_vm0, %v660_v21, 0.0  ;;  %v707_v37 = vsel %vm274_vm0, %v661_v46, 0.0  ;;  %v714_v11 = vsel %vm274_vm0, %v662_v22, 0.0  ;;  %v721_v52 = vsel %vm274_vm0, %v663_v26, 0.0 }
  0xbd   : > { %v674_v53 = vadd.f32 %v673_v34, %v672_v51  ;;  %v681_v42 = vadd.f32 %v680_v40, %v679_v57  ;;  %v688_v38 = vadd.f32 %v687_v58, %v686_v31  ;;  %v695_v56 = vadd.f32 %v694_v48, %v693_v33 }
  0xbe   : > { %v701_v61 = vrot.slane %v700_v36, 4  ;;  %v708_v62 = vrot.slane %v707_v37, 4  ;;  %v715_v49 = vrot.slane %v714_v11, 4  ;;  %v722_v8 = vrot.slane %v721_v52, 4 }
  0xbf   : > { %v2639_v13 = vadd.f32 %v513_v17, %v2475_v35  ;;  %v2642_v14 = vadd.f32 %v527_v18, %v2495_v43  ;;  %v2645_v60 = vadd.f32 %v541_v19, %v2498_v44  ;;  %v2648_v0 = vadd.f32 %v555_v20, %v2501_v45  ;;  %v638_v35 = vld [vmem:[%s3816_s1 + $0x1a0] sm:$0xf]  ;;  %v639_v43 = vld [vmem:[%s3816_s1 + $0x1a8] sm:$0xf]  ;;  %v640_v17 = vld [vmem:[%s3816_s1 + $0x1f0] sm:$0xf] }
  0xc0   : > { %v702_v44 = vadd.f32 %v701_v61, %v700_v36  ;;  %v709_v1 = vadd.f32 %v708_v62, %v707_v37  ;;  %v716_v45 = vadd.f32 %v715_v49, %v714_v11  ;;  %v723_v2 = vadd.f32 %v722_v8, %v721_v52  ;;  %v641_v18 = vld [vmem:[%s3816_s1 + $0x1f8] sm:$0xf] }
  0xc1   : > { %v2663_v7 = vadd.f32 %v569_v28, %v2504_v47  ;;  %v2666_v4 = vadd.f32 %v583_v29, %v2514_v50  ;;  %v2669_v12 = vadd.f32 %v597_v30, %v2517_v9  ;;  %v2672_v16 = vadd.f32 %v611_v27, %v2520_v10  ;;  %v642_v47 = vld [vmem:[%s3816_s1 + $0x240] sm:$0xf]  ;;  %v643_v50 = vld [vmem:[%s3816_s1 + $0x248] sm:$0xf] }
  0xc2   : > { %v675_v9 = vrot.slane %v674_v53, 2  ;;  %v682_v19 = vrot.slane %v681_v42, 2  ;;  %v689_v10 = vrot.slane %v688_v38, 2  ;;  %v696_v20 = vrot.slane %v695_v56, 2 }
  0xc3   : > { %v664_v21 = vmul.f32 %v2585_v39, %v636_v5  ;;  %v665_v46 = vmul.f32 %v2589_v59, %v637_v6  ;;  %v666_v22 = vmul.f32 %v2585_v39, %v638_v35  ;;  %v667_v26 = vmul.f32 %v2589_v59, %v639_v43 }
  0xc4   : > { %v703_v28 = vrot.slane %v702_v44, 2  ;;  %v710_v29 = vrot.slane %v709_v1, 2  ;;  %v717_v30 = vrot.slane %v716_v45, 2  ;;  %v724_v27 = vrot.slane %v723_v2, 2 }
  0xc5   : > { %v668_v51 = vmul.f32 %v2585_v39, %v640_v17  ;;  %v669_v57 = vmul.f32 %v2589_v59, %v641_v18  ;;  %v670_v31 = vmul.f32 %v2585_v39, %v642_v47  ;;  %v671_v33 = vmul.f32 %v2589_v59, %v643_v50 }
  0xc6   : > { %v676_v34 = vadd.f32 %v675_v9, %v674_v53  ;;  %v683_v40 = vadd.f32 %v682_v19, %v681_v42  ;;  %v690_v58 = vadd.f32 %v689_v10, %v688_v38  ;;  %v697_v48 = vadd.f32 %v696_v20, %v695_v56 }
  0xc7   : > { %v728_v36 = vsel %vm274_vm0, %v664_v21, 0.0  ;;  %v735_v37 = vsel %vm274_vm0, %v665_v46, 0.0  ;;  %v742_v11 = vsel %vm274_vm0, %v666_v22, 0.0  ;;  %v749_v52 = vsel %vm274_vm0, %v667_v26, 0.0 }
  0xc8   : > { %v704_v61 = vadd.f32 %v703_v28, %v702_v44  ;;  %v711_v62 = vadd.f32 %v710_v29, %v709_v1  ;;  %v718_v49 = vadd.f32 %v717_v30, %v716_v45  ;;  %v725_v8 = vadd.f32 %v724_v27, %v723_v2 }
  0xc9   : > { %v729_v5 = vrot.slane %v728_v36, 4  ;;  %v736_v39 = vrot.slane %v735_v37, 4  ;;  %v743_v6 = vrot.slane %v742_v11, 4  ;;  %v750_v59 = vrot.slane %v749_v52, 4 }
  0xca   : > { %v756_v53 = vsel %vm274_vm0, %v668_v51, 0.0  ;;  %v763_v42 = vsel %vm274_vm0, %v669_v57, 0.0  ;;  %v770_v38 = vsel %vm274_vm0, %v670_v31, 0.0  ;;  %v777_v56 = vsel %vm274_vm0, %v671_v33, 0.0 }
  0xcb   : > { %v730_v35 = vadd.f32 %v729_v5, %v728_v36  ;;  %v737_v43 = vadd.f32 %v736_v39, %v735_v37  ;;  %v744_v17 = vadd.f32 %v743_v6, %v742_v11  ;;  %v751_v18 = vadd.f32 %v750_v59, %v749_v52 }
  0xcc   : > { %v757_v44 = vrot.slane %v756_v53, 4  ;;  %v764_v1 = vrot.slane %v763_v42, 4  ;;  %v771_v45 = vrot.slane %v770_v38, 4  ;;  %v778_v2 = vrot.slane %v777_v56, 4 }
  0xcd   : > { %v731_v47 = vrot.slane %v730_v35, 2  ;;  %v738_v50 = vrot.slane %v737_v43, 2  ;;  %v745_v9 = vrot.slane %v744_v17, 2  ;;  %v752_v19 = vrot.slane %v751_v18, 2 }
  0xce   : > { %v758_v10 = vadd.f32 %v757_v44, %v756_v53  ;;  %v765_v20 = vadd.f32 %v764_v1, %v763_v42  ;;  %v772_v21 = vadd.f32 %v771_v45, %v770_v38  ;;  %v779_v46 = vadd.f32 %v778_v2, %v777_v56  ;;  %v800_v45 = vld [vmem:[%s3816_s1 + $0x10] sm:$0xf0] }
  0xcf   : > { %v732_v22 = vadd.f32 %v731_v47, %v730_v35  ;;  %v739_v26 = vadd.f32 %v738_v50, %v737_v43  ;;  %v746_v28 = vadd.f32 %v745_v9, %v744_v17  ;;  %v753_v29 = vadd.f32 %v752_v19, %v751_v18  ;;  %v802_v19 = vld [vmem:[%s3816_s1 + $0x60] sm:$0xf0] }
  0xd0   : > { %v759_v30 = vrot.slane %v758_v10, 2  ;;  %v766_v27 = vrot.slane %v765_v20, 2  ;;  %v773_v51 = vrot.slane %v772_v21, 2  ;;  %v780_v57 = vrot.slane %v779_v46, 2 }
  0xd1   : > { %v677_v31 = vrot.slane %v676_v34, 1  ;;  %v684_v33 = vrot.slane %v683_v40, 1  ;;  %v691_v36 = vrot.slane %v690_v58, 1  ;;  %v698_v37 = vrot.slane %v697_v48, 1 }
  0xd2   : > { %v705_v11 = vrot.slane %v704_v61, 1  ;;  %v712_v52 = vrot.slane %v711_v62, 1  ;;  %v719_v5 = vrot.slane %v718_v49, 1  ;;  %v726_v39 = vrot.slane %v725_v8, 1 }
  0xd3   : > { %v733_v6 = vrot.slane %v732_v22, 1  ;;  %v740_v59 = vrot.slane %v739_v26, 1  ;;  %v747_v53 = vrot.slane %v746_v28, 1  ;;  %v754_v42 = vrot.slane %v753_v29, 1 }
  0xd4   : > { %v2702_v38 = vadd.f32 %v759_v30, %v758_v10  ;;  %v2704_v56 = vadd.f32 %v766_v27, %v765_v20  ;;  %v2706_v35 = vadd.f32 %v773_v51, %v772_v21  ;;  %v2708_v43 = vadd.f32 %v780_v57, %v779_v46  ;;  %v812_v10 = vld [vmem:[%s3816_s1 + $0x1f0] sm:$0xf0] }
  0xd5   : > { %v678_v17 = vadd.f32 %v677_v31, %v676_v34  ;;  %v685_v18 = vadd.f32 %v684_v33, %v683_v40  ;;  %v692_v44 = vadd.f32 %v691_v36, %v690_v58  ;;  %v699_v1 = vadd.f32 %v698_v37, %v697_v48  ;;  %v804_v34 = vld [vmem:[%s3816_s1 + $0xb0] sm:$0xf0]  ;;  %v806_v40 = vld [vmem:[%s3816_s1 + $0x100] sm:$0xf0] }
  0xd6   : > { %v2713_v2 = vadd.f32 %v705_v11, %v704_v61  ;;  %v2715_v47 = vadd.f32 %v712_v52, %v711_v62  ;;  %v2717_v50 = vadd.f32 %v719_v5, %v718_v49  ;;  %v2719_v9 = vadd.f32 %v726_v39, %v725_v8  ;;  %v808_v49 = vld [vmem:[%s3816_s1 + $0x150] sm:$0xf0]  ;;  %v810_v8 = vld [vmem:[%s3816_s1 + $0x1a0] sm:$0xf0] }
  0xd7   : > { %v2730_v58 = vadd.f32 %v733_v6, %v732_v22  ;;  %v2732_v48 = vadd.f32 %v740_v59, %v739_v26  ;;  %v2734_v61 = vadd.f32 %v747_v53, %v746_v28  ;;  %v2736_v62 = vadd.f32 %v754_v42, %v753_v29  ;;  %v814_v26 = vld [vmem:[%s3816_s1 + $0x240] sm:$0xf0] }
  0xd8   : > { %v761_v20 = vrot.slane %v2702_v38, 1  ;;  %v768_v21 = vrot.slane %v2704_v56, 1  ;;  %v775_v46 = vrot.slane %v2706_v35, 1  ;;  %v782_v22 = vrot.slane %v2708_v43, 1 }
  0xd9   : > { %v2755_v28 = vadd.f32 %v678_v17, %v2549_v23  ;;  %v2758_v29 = vadd.f32 %v685_v18, %v2639_v13  ;;  %v2761_v30 = vadd.f32 %v692_v44, %v2552_v24  ;;  %v2764_v27 = vadd.f32 %v699_v1, %v2642_v14 }
  0xda   : > { %v827_v51 = vmul.f32 %v2593_v15, %v800_v45  ;;  %v829_v57 = vmul.f32 %v2593_v15, %v802_v19  ;;  %v831_v31 = vmul.f32 %v2593_v15, %v804_v34  ;;  %v833_v33 = vmul.f32 %v2593_v15, %v806_v40 }
  0xdb   : > { %v835_v23 = vmul.f32 %v2593_v15, %v808_v49  ;;  %v837_v36 = vmul.f32 %v2593_v15, %v810_v8  ;;  %v839_v13 = vmul.f32 %v2593_v15, %v812_v10  ;;  %v841_v24 = vmul.f32 %v2593_v15, %v814_v26 }
  0xdc   : > { %v859_v37 = vrot.slane %v827_v51, 4  ;;  %v861_v11 = vrot.slane %v829_v57, 4  ;;  %v863_v14 = vrot.slane %v831_v31, 4  ;;  %v865_v52 = vrot.slane %v833_v33, 4 }
  0xdd   : > { %v867_v5 = vrot.slane %v835_v23, 4  ;;  %v869_v39 = vrot.slane %v837_v36, 4  ;;  %v871_v6 = vrot.slane %v839_v13, 4  ;;  %v873_v59 = vrot.slane %v841_v24, 4 }
  0xde   : > { %v891_v53 = vsel %vm274_vm0, %v859_v37, 0.0  ;;  %v905_v42 = vsel %vm274_vm0, %v861_v11, 0.0  ;;  %v919_v17 = vsel %vm274_vm0, %v863_v14, 0.0  ;;  %v933_v18 = vsel %vm274_vm0, %v865_v52, 0.0 }
  0xdf   : > { %v892_v44 = vrot.slane %v891_v53, 4  ;;  %v906_v1 = vrot.slane %v905_v42, 4  ;;  %v920_v45 = vrot.slane %v919_v17, 4  ;;  %v934_v15 = vrot.slane %v933_v18, 4 }
  0xe0   : > { %v947_v19 = vsel %vm274_vm0, %v867_v5, 0.0  ;;  %v961_v34 = vsel %vm274_vm0, %v869_v39, 0.0  ;;  %v975_v40 = vsel %vm274_vm0, %v871_v6, 0.0  ;;  %v989_v49 = vsel %vm274_vm0, %v873_v59, 0.0 }
  0xe1   : > { %v893_v8 = vadd.f32 %v892_v44, %v891_v53  ;;  %v907_v10 = vadd.f32 %v906_v1, %v905_v42  ;;  %v921_v26 = vadd.f32 %v920_v45, %v919_v17  ;;  %v935_v51 = vadd.f32 %v934_v15, %v933_v18 }
  0xe2   : > { %v948_v57 = vrot.slane %v947_v19, 4  ;;  %v962_v31 = vrot.slane %v961_v34, 4  ;;  %v976_v33 = vrot.slane %v975_v40, 4  ;;  %v990_v23 = vrot.slane %v989_v49, 4 }
  0xe3   : > { %v894_v36 = vrot.slane %v893_v8, 2  ;;  %v908_v13 = vrot.slane %v907_v10, 2  ;;  %v922_v24 = vrot.slane %v921_v26, 2  ;;  %v936_v37 = vrot.slane %v935_v51, 2 }
  0xe4   : > { %v949_v11 = vadd.f32 %v948_v57, %v947_v19  ;;  %v963_v14 = vadd.f32 %v962_v31, %v961_v34  ;;  %v977_v52 = vadd.f32 %v976_v33, %v975_v40  ;;  %v991_v5 = vadd.f32 %v990_v23, %v989_v49 }
  0xe5   : > { %v762_v39 = vadd.f32 %v761_v20, %v2702_v38  ;;  %v895_v6 = vadd.f32 %v894_v36, %v893_v8  ;;  %v909_v59 = vadd.f32 %v908_v13, %v907_v10  ;;  %v923_v53 = vadd.f32 %v922_v24, %v921_v26  ;;  %v815_v8 = vld [vmem:[%s3816_s1 + $0x248] sm:$0xf0] }
  0xe6   : > { %v950_v42 = vrot.slane %v949_v11, 2  ;;  %v964_v17 = vrot.slane %v963_v14, 2  ;;  %v978_v18 = vrot.slane %v977_v52, 2  ;;  %v992_v44 = vrot.slane %v991_v5, 2 }
  0xe7   : > { %v769_v1 = vadd.f32 %v768_v21, %v2704_v56  ;;  %v776_v45 = vadd.f32 %v775_v46, %v2706_v35  ;;  %v783_v15 = vadd.f32 %v782_v22, %v2708_v43  ;;  %v2788_v19 = vadd.f32 %v2713_v2, %v2555_v25  ;;  %v801_v46 = vld [vmem:[%s3816_s1 + $0x18] sm:$0xf0] }
  0xe8   : > { %v2792_v38 = vadd.f32 %v2715_v47, %v2645_v60  ;;  %v2796_v20 = vadd.f32 %v2717_v50, %v2572_v3  ;;  %v2800_v34 = vadd.f32 %v2719_v9, %v2648_v0  ;;  %v2802_v56 = vadd.f32 %v936_v37, %v935_v51  ;;  %v821_v50 = vpop.permute.xlu0 %820  ;;  %v809_v22 = vld [vmem:[%s3816_s1 + $0x158] sm:$0xf0] }
  0xe9   : > { %v2806_v35 = vadd.f32 %v2730_v58, %v2599_v54  ;;  %v896_v25 = vrot.slane %v895_v6, 1  ;;  %v910_v43 = vrot.slane %v909_v59, 1  ;;  %v924_v2 = vrot.slane %v923_v53, 1 }
  0xea   : > { %v2808_v21 = vadd.f32 %v950_v42, %v949_v11  ;;  %v2810_v60 = vadd.f32 %v964_v17, %v963_v14  ;;  %v2812_v47 = vadd.f32 %v978_v18, %v977_v52  ;;  %v2814_v3 = vadd.f32 %v992_v44, %v991_v5 }
  0xeb   : > { %v2818_v0 = vadd.f32 %v2732_v48, %v2663_v7  ;;  %v2822_v54 = vadd.f32 %v2734_v61, %v2602_v32  ;;  %v2826_v9 = vadd.f32 %v2736_v62, %v2666_v4  ;;  %v2829_v58 = vadd.f32 %v762_v39, %v2605_v63  ;;  %v803_v7 = vld [vmem:[%s3816_s1 + $0x68] sm:$0xf0]  ;;  %v805_v32 = vld [vmem:[%s3816_s1 + $0xb8] sm:$0xf0] }
  0xec   : > { %v2841_v48 = vadd.f32 %v769_v1, %v2669_v12  ;;  %v2844_v4 = vadd.f32 %v776_v45, %v2608_v55  ;;  %v2847_v63 = vadd.f32 %v783_v15, %v2672_v16  ;;  %v938_v61 = vrot.slane %v2802_v56, 1  ;;  %v807_v62 = vld [vmem:[%s3816_s1 + $0x108] sm:$0xf0]  ;;  %v813_v16 = vld [vmem:[%s3816_s1 + $0x1f8] sm:$0xf0] }
  0xed   : > { %v897_v40 = vadd.f32 %v896_v25, %v895_v6  ;;  %v911_v49 = vadd.f32 %v910_v43, %v909_v59  ;;  %v2856_v12 = vadd.f32 %v924_v2, %v923_v53  ;;  %v811_v55 = vld [vmem:[%s3816_s1 + $0x1a8] sm:$0xf0]  ;;  %v824_v10 = vsel %vm822_vm3, %v2557_v41, %v821_v50 }
  0xee   : > { %v952_v26 = vrot.slane %v2808_v21, 1  ;;  %v966_v51 = vrot.slane %v2810_v60, 1  ;;  %v980_v57 = vrot.slane %v2812_v47, 1  ;;  %v994_v31 = vrot.slane %v2814_v3, 1 }
  0xef   : > { %v828_v33 = vmul.f32 %v824_v10, %v801_v46  ;;  %v830_v23 = vmul.f32 %v824_v10, %v803_v7  ;;  %v832_v36 = vmul.f32 %v824_v10, %v805_v32  ;;  %v834_v13 = vmul.f32 %v824_v10, %v807_v62  ;;  %v1036_v32 = vpop.permute.xlu1 %1035 }
  0xf0   : > { %v836_v24 = vmul.f32 %v824_v10, %v809_v22  ;;  %v838_v37 = vmul.f32 %v824_v10, %v811_v55  ;;  %v840_v11 = vmul.f32 %v824_v10, %v813_v16  ;;  %v842_v14 = vmul.f32 %v824_v10, %v815_v8 }
  0xf1   : > { %v860_v52 = vrot.slane %v828_v33, 4  ;;  %v862_v5 = vrot.slane %v830_v23, 4  ;;  %v864_v39 = vrot.slane %v832_v36, 4  ;;  %v866_v41 = vrot.slane %v834_v13, 4 }
  0xf2   : > { %v868_v6 = vrot.slane %v836_v24, 4  ;;  %v870_v59 = vrot.slane %v838_v37, 4  ;;  %v872_v53 = vrot.slane %v840_v11, 4  ;;  %v874_v42 = vrot.slane %v842_v14, 4 }
  0xf3   : > { %v898_v17 = vsel %vm274_vm0, %v860_v52, 0.0  ;;  %v912_v18 = vsel %vm274_vm0, %v862_v5, 0.0  ;;  %v926_v44 = vsel %vm274_vm0, %v864_v39, 0.0  ;;  %v940_v1 = vsel %vm274_vm0, %v866_v41, 0.0 }
  0xf4   : > { %v899_v45 = vrot.slane %v898_v17, 4  ;;  %v913_v15 = vrot.slane %v912_v18, 4  ;;  %v927_v25 = vrot.slane %v926_v44, 4  ;;  %v941_v43 = vrot.slane %v940_v1, 4 }
  0xf5   : > { %v954_v2 = vsel %vm274_vm0, %v868_v6, 0.0  ;;  %v968_v50 = vsel %vm274_vm0, %v870_v59, 0.0  ;;  %v982_v46 = vsel %vm274_vm0, %v872_v53, 0.0  ;;  %v996_v7 = vsel %vm274_vm0, %v874_v42, 0.0 }
  0xf6   : > { %v900_v62 = vadd.f32 %v899_v45, %v898_v17  ;;  %v914_v22 = vadd.f32 %v913_v15, %v912_v18  ;;  %v928_v55 = vadd.f32 %v927_v25, %v926_v44  ;;  %v942_v16 = vadd.f32 %v941_v43, %v940_v1  ;;  %v1040_v25 = vpop.permute.xlu1 %1039  ;;  %v1038_v43 = vpop.permute.xlu0 %1037 }
  0xf7   : > { %v955_v8 = vrot.slane %v954_v2, 4  ;;  %v969_v10 = vrot.slane %v968_v50, 4  ;;  %v983_v33 = vrot.slane %v982_v46, 4  ;;  %v997_v23 = vrot.slane %v996_v7, 4 }
  0xf8   : > { %v901_v36 = vrot.slane %v900_v62, 2  ;;  %v915_v13 = vrot.slane %v914_v22, 2  ;;  %v929_v24 = vrot.slane %v928_v55, 2  ;;  %v943_v37 = vrot.slane %v942_v16, 2 }
  0xf9   : > { %v956_v11 = vadd.f32 %v955_v8, %v954_v2  ;;  %v970_v14 = vadd.f32 %v969_v10, %v968_v50  ;;  %v984_v52 = vadd.f32 %v983_v33, %v982_v46  ;;  %v998_v5 = vadd.f32 %v997_v23, %v996_v7 }
  0xfa   : > { %v939_v39 = vadd.f32 %v938_v61, %v2802_v56  ;;  %v2883_v41 = vadd.f32 %v897_v40, %v2755_v28  ;;  %v2886_v6 = vadd.f32 %v911_v49, %v2761_v30  ;;  %v902_v59 = vadd.f32 %v901_v36, %v900_v62 }
  0xfb   : > { %v957_v53 = vrot.slane %v956_v11, 2  ;;  %v971_v42 = vrot.slane %v970_v14, 2  ;;  %v985_v17 = vrot.slane %v984_v52, 2  ;;  %v999_v18 = vrot.slane %v998_v5, 2 }
  0xfc   : > { %v903_v44 = vrot.slane %v902_v59, 1  ;;  %v916_v1 = vadd.f32 %v915_v13, %v914_v22  ;;  %v930_v45 = vadd.f32 %v929_v24, %v928_v55  ;;  %v944_v15 = vadd.f32 %v943_v37, %v942_v16  ;;  %v1023_v55 = vld [vmem:[%s3816_s1 + $0xc0] sm:$0xf]  ;;  %v1024_v16 = vld [vmem:[%s3816_s1 + $0xc8] sm:$0xf] }
  0xfd   : > { %v953_v56 = vadd.f32 %v952_v26, %v2808_v21  ;;  %v967_v28 = vadd.f32 %v966_v51, %v2810_v60  ;;  %v981_v30 = vadd.f32 %v980_v57, %v2812_v47  ;;  %v995_v61 = vadd.f32 %v994_v31, %v2814_v3  ;;  %v1019_v60 = vld [vmem:[%s3816_s1 + $0x20] sm:$0xf]  ;;  %v1020_v47 = vld [vmem:[%s3816_s1 + $0x28] sm:$0xf]  ;;  %v1021_v3 = vld [vmem:[%s3816_s1 + $0x70] sm:$0xf] }
  0xfe   : > { %v958_v40 = vadd.f32 %v957_v53, %v956_v11  ;;  %v972_v49 = vadd.f32 %v971_v42, %v970_v14  ;;  %v986_v2 = vadd.f32 %v985_v17, %v984_v52  ;;  %v1000_v50 = vadd.f32 %v999_v18, %v998_v5  ;;  %v1022_v31 = vld [vmem:[%s3816_s1 + $0x78] sm:$0xf] }
  0xff   : > { %v2902_v46 = vadd.f32 %v2856_v12, %v2788_v19  ;;  %v2905_v21 = vadd.f32 %v939_v39, %v2796_v20  ;;  %v2917_v26 = vsel %vm1041_vm4, %v1036_v32, %v1038_v43  ;;  %v2920_v19 = vsel %vm1041_vm4, %v1038_v43, %v1040_v25 }
 0x100   : > { %v904_v20 = vadd.f32 %v903_v44, %v902_v59  ;;  %v917_v12 = vrot.slane %v916_v1, 1  ;;  %v931_v51 = vrot.slane %v930_v45, 1  ;;  %v945_v57 = vrot.slane %v944_v15, 1 }
 0x101   : > { %v2926_v7 = vadd.f32 %v953_v56, %v2806_v35  ;;  %v2929_v62 = vadd.f32 %v967_v28, %v2822_v54  ;;  %v2932_v32 = vadd.f32 %v981_v30, %v2829_v58  ;;  %v2935_v22 = vadd.f32 %v995_v61, %v2844_v4  ;;  %v1025_v35 = vld [vmem:[%s3816_s1 + $0x110] sm:$0xf]  ;;  %v1026_v4 = vld [vmem:[%s3816_s1 + $0x118] sm:$0xf] }
 0x102   : > { %v959_v54 = vrot.slane %v958_v40, 1  ;;  %v973_v8 = vrot.slane %v972_v49, 1  ;;  %v987_v10 = vrot.slane %v986_v2, 1  ;;  %v1001_v58 = vrot.slane %v1000_v50, 1 }
 0x103   : > { %v1046_v33 = vmul.f32 %v2917_v26, %v1019_v60  ;;  %v1047_v23 = vmul.f32 %v2920_v19, %v1020_v47  ;;  %v1048_v36 = vmul.f32 %v2917_v26, %v1021_v3  ;;  %v1049_v13 = vmul.f32 %v2920_v19, %v1022_v31 }
 0x104   : > { %v918_v24 = vadd.f32 %v917_v12, %v916_v1  ;;  %v932_v37 = vadd.f32 %v931_v51, %v930_v45  ;;  %v946_v11 = vadd.f32 %v945_v57, %v944_v15  ;;  %v2954_v14 = vadd.f32 %v904_v20, %v2758_v29 }
 0x105   : > { %v1050_v52 = vmul.f32 %v2917_v26, %v1023_v55  ;;  %v1051_v5 = vmul.f32 %v2920_v19, %v1024_v16  ;;  %v1052_v39 = vmul.f32 %v2917_v26, %v1025_v35  ;;  %v1053_v59 = vmul.f32 %v2920_v19, %v1026_v4  ;;  %v1027_v55 = vld [vmem:[%s3816_s1 + $0x160] sm:$0xf]  ;;  %v1028_v35 = vld [vmem:[%s3816_s1 + $0x168] sm:$0xf] }
 0x106   : > { %v960_v53 = vadd.f32 %v959_v54, %v958_v40  ;;  %v974_v42 = vadd.f32 %v973_v8, %v972_v49  ;;  %v988_v17 = vadd.f32 %v987_v10, %v986_v2  ;;  %v1002_v18 = vadd.f32 %v1001_v58, %v1000_v50 }
 0x107   : > { %v1062_v44 = vsel %vm274_vm0, %v1046_v33, 0.0  ;;  %v1069_v1 = vsel %vm274_vm0, %v1047_v23, 0.0  ;;  %v1076_v45 = vsel %vm274_vm0, %v1048_v36, 0.0  ;;  %v1083_v29 = vsel %vm274_vm0, %v1049_v13, 0.0  ;;  %v1031_v36 = vld [vmem:[%s3816_s1 + $0x200] sm:$0xf] }
 0x108   : > { %v1063_v15 = vrot.slane %v1062_v44, 4  ;;  %v1070_v25 = vrot.slane %v1069_v1, 4  ;;  %v1077_v43 = vrot.slane %v1076_v45, 4  ;;  %v1084_v56 = vrot.slane %v1083_v29, 4  ;;  %v1032_v13 = vld [vmem:[%s3816_s1 + $0x208] sm:$0xf] }
 0x109   : > { %v1090_v28 = vsel %vm274_vm0, %v1050_v52, 0.0  ;;  %v1097_v30 = vsel %vm274_vm0, %v1051_v5, 0.0  ;;  %v1104_v61 = vsel %vm274_vm0, %v1052_v39, 0.0  ;;  %v1111_v40 = vsel %vm274_vm0, %v1053_v59, 0.0 }
 0x10a   : > { %v1064_v49 = vadd.f32 %v1063_v15, %v1062_v44  ;;  %v1071_v2 = vadd.f32 %v1070_v25, %v1069_v1  ;;  %v1078_v50 = vadd.f32 %v1077_v43, %v1076_v45  ;;  %v1085_v60 = vadd.f32 %v1084_v56, %v1083_v29 }
 0x10b   : > { %v1091_v47 = vrot.slane %v1090_v28, 4  ;;  %v1098_v3 = vrot.slane %v1097_v30, 4  ;;  %v1105_v20 = vrot.slane %v1104_v61, 4  ;;  %v1112_v12 = vrot.slane %v1111_v40, 4 }
 0x10c   : > { %v2969_v51 = vadd.f32 %v918_v24, %v2764_v27  ;;  %v2972_v57 = vadd.f32 %v932_v37, %v2792_v38  ;;  %v2975_v31 = vadd.f32 %v946_v11, %v2800_v34  ;;  %v1065_v16 = vrot.slane %v1064_v49, 2  ;;  %v1029_v27 = vld [vmem:[%s3816_s1 + $0x1b0] sm:$0xf]  ;;  %v1030_v38 = vld [vmem:[%s3816_s1 + $0x1b8] sm:$0xf] }
 0x10d   : > { %v1092_v54 = vadd.f32 %v1091_v47, %v1090_v28  ;;  %v1099_v34 = vadd.f32 %v1098_v3, %v1097_v30  ;;  %v1106_v8 = vadd.f32 %v1105_v20, %v1104_v61  ;;  %v1113_v10 = vadd.f32 %v1112_v12, %v1111_v40 }
 0x10e   : > { %v2990_v58 = vadd.f32 %v960_v53, %v2818_v0  ;;  %v2993_v4 = vadd.f32 %v974_v42, %v2826_v9  ;;  %v2996_v33 = vadd.f32 %v988_v17, %v2841_v48  ;;  %v2999_v23 = vadd.f32 %v1002_v18, %v2847_v63  ;;  %v1033_v0 = vld [vmem:[%s3816_s1 + $0x250] sm:$0xf]  ;;  %v1034_v9 = vld [vmem:[%s3816_s1 + $0x258] sm:$0xf] }
 0x10f   : > { %v3013_v48 = vadd.f32 %v1065_v16, %v1064_v49  ;;  %v1072_v63 = vrot.slane %v1071_v2, 2  ;;  %v1079_v24 = vrot.slane %v1078_v50, 2  ;;  %v1086_v37 = vrot.slane %v1085_v60, 2 }
 0x110   : > { %v1054_v11 = vmul.f32 %v2917_v26, %v1027_v55  ;;  %v1055_v52 = vmul.f32 %v2920_v19, %v1028_v35  ;;  %v1056_v5 = vmul.f32 %v2917_v26, %v1029_v27  ;;  %v1057_v39 = vmul.f32 %v2920_v19, %v1030_v38 }
 0x111   : > { %v1093_v59 = vrot.slane %v1092_v54, 2  ;;  %v1100_v53 = vrot.slane %v1099_v34, 2  ;;  %v1107_v42 = vrot.slane %v1106_v8, 2  ;;  %v1114_v17 = vrot.slane %v1113_v10, 2 }
 0x112   : > { %v1058_v18 = vmul.f32 %v2917_v26, %v1031_v36  ;;  %v1059_v44 = vmul.f32 %v2920_v19, %v1032_v13  ;;  %v1060_v1 = vmul.f32 %v2917_v26, %v1033_v0  ;;  %v1061_v45 = vmul.f32 %v2920_v19, %v1034_v9 }
 0x113   : > { %v1067_v29 = vrot.slane %v3013_v48, 1  ;;  %v1073_v15 = vadd.f32 %v1072_v63, %v1071_v2  ;;  %v1080_v25 = vadd.f32 %v1079_v24, %v1078_v50  ;;  %v1087_v43 = vadd.f32 %v1086_v37, %v1085_v60 }
 0x114   : > { %v1118_v56 = vsel %vm274_vm0, %v1054_v11, 0.0  ;;  %v1125_v28 = vsel %vm274_vm0, %v1055_v52, 0.0  ;;  %v1132_v30 = vsel %vm274_vm0, %v1056_v5, 0.0  ;;  %v1139_v61 = vsel %vm274_vm0, %v1057_v39, 0.0 }
 0x115   : > { %v1094_v40 = vadd.f32 %v1093_v59, %v1092_v54  ;;  %v1101_v49 = vadd.f32 %v1100_v53, %v1099_v34  ;;  %v1108_v47 = vadd.f32 %v1107_v42, %v1106_v8  ;;  %v1115_v3 = vadd.f32 %v1114_v17, %v1113_v10 }
 0x116   : > { %v1119_v26 = vrot.slane %v1118_v56, 4  ;;  %v1126_v20 = vrot.slane %v1125_v28, 4  ;;  %v1133_v19 = vrot.slane %v1132_v30, 4  ;;  %v1140_v12 = vrot.slane %v1139_v61, 4 }
 0x117   : > { %v1146_v2 = vsel %vm274_vm0, %v1058_v18, 0.0  ;;  %v1153_v50 = vsel %vm274_vm0, %v1059_v44, 0.0  ;;  %v1160_v60 = vsel %vm274_vm0, %v1060_v1, 0.0  ;;  %v1167_v55 = vsel %vm274_vm0, %v1061_v45, 0.0 }
 0x118   : > { %v1120_v16 = vadd.f32 %v1119_v26, %v1118_v56  ;;  %v1127_v35 = vadd.f32 %v1126_v20, %v1125_v28  ;;  %v1134_v27 = vadd.f32 %v1133_v19, %v1132_v30  ;;  %v1141_v38 = vadd.f32 %v1140_v12, %v1139_v61 }
 0x119   : > { %v1147_v54 = vrot.slane %v1146_v2, 4  ;;  %v1154_v34 = vrot.slane %v1153_v50, 4  ;;  %v1161_v8 = vrot.slane %v1160_v60, 4  ;;  %v1168_v10 = vrot.slane %v1167_v55, 4 }
 0x11a   : > { %v1121_v36 = vrot.slane %v1120_v16, 2  ;;  %v1128_v13 = vrot.slane %v1127_v35, 2  ;;  %v1135_v0 = vrot.slane %v1134_v27, 2  ;;  %v1142_v9 = vrot.slane %v1141_v38, 2 }
 0x11b   : > { %v1148_v63 = vadd.f32 %v1147_v54, %v1146_v2  ;;  %v1155_v24 = vadd.f32 %v1154_v34, %v1153_v50  ;;  %v1162_v37 = vadd.f32 %v1161_v8, %v1160_v60  ;;  %v1169_v11 = vadd.f32 %v1168_v10, %v1167_v55 }
 0x11c   : > { %v1122_v52 = vadd.f32 %v1121_v36, %v1120_v16  ;;  %v1129_v5 = vadd.f32 %v1128_v13, %v1127_v35  ;;  %v1136_v39 = vadd.f32 %v1135_v0, %v1134_v27  ;;  %v1143_v59 = vadd.f32 %v1142_v9, %v1141_v38 }
 0x11d   : > { %v1149_v53 = vrot.slane %v1148_v63, 2  ;;  %v1156_v42 = vrot.slane %v1155_v24, 2  ;;  %v1163_v17 = vrot.slane %v1162_v37, 2  ;;  %v1170_v18 = vrot.slane %v1169_v11, 2 }
 0x11e   : > { %v1074_v44 = vrot.slane %v1073_v15, 1  ;;  %v1081_v1 = vrot.slane %v1080_v25, 1  ;;  %v1088_v45 = vrot.slane %v1087_v43, 1  ;;  %v1095_v56 = vrot.slane %v1094_v40, 1 }
 0x11f   : > { %v1150_v28 = vadd.f32 %v1149_v53, %v1148_v63  ;;  %v1157_v30 = vadd.f32 %v1156_v42, %v1155_v24  ;;  %v1164_v61 = vadd.f32 %v1163_v17, %v1162_v37  ;;  %v1171_v26 = vadd.f32 %v1170_v18, %v1169_v11  ;;  %v1196_v24 = vld [vmem:[%s3816_s1 + $0x110] sm:$0xf0]  ;;  %v1198_v37 = vld [vmem:[%s3816_s1 + $0x160] sm:$0xf0] }
 0x120   : > { %v1102_v20 = vrot.slane %v1101_v49, 1  ;;  %v1109_v19 = vrot.slane %v1108_v47, 1  ;;  %v1116_v12 = vrot.slane %v1115_v3, 1  ;;  %v1123_v2 = vrot.slane %v1122_v52, 1  ;;  %v1204_v53 = vld [vmem:[%s3816_s1 + $0x250] sm:$0xf0] }
 0x121   : > { %v1068_v50 = vadd.f32 %v1067_v29, %v3013_v48  ;;  %v1130_v60 = vrot.slane %v1129_v5, 1  ;;  %v1137_v55 = vrot.slane %v1136_v39, 1  ;;  %v1144_v16 = vrot.slane %v1143_v59, 1  ;;  %v3043_v48 = vpop.permute.xlu1 %1208  ;;  %v1190_v29 = vld [vmem:[%s3816_s1 + $0x20] sm:$0xf0] }
 0x122   : > { %v1075_v35 = vadd.f32 %v1074_v44, %v1073_v15  ;;  %v1082_v27 = vadd.f32 %v1081_v1, %v1080_v25  ;;  %v1089_v38 = vadd.f32 %v1088_v45, %v1087_v43  ;;  %v1151_v54 = vrot.slane %v1150_v28, 1  ;;  %v1192_v15 = vld [vmem:[%s3816_s1 + $0x70] sm:$0xf0]  ;;  %v1207_v25 = vpop.permute.xlu0 %1206 }
 0x123   : > { %v3033_v34 = vadd.f32 %v1095_v56, %v1094_v40  ;;  %v1158_v8 = vrot.slane %v1157_v30, 1  ;;  %v1165_v10 = vrot.slane %v1164_v61, 1  ;;  %v1172_v36 = vrot.slane %v1171_v26, 1 }
 0x124   : > { %v3035_v13 = vadd.f32 %v1102_v20, %v1101_v49  ;;  %v3037_v0 = vadd.f32 %v1109_v19, %v1108_v47  ;;  %v3039_v9 = vadd.f32 %v1116_v12, %v1115_v3  ;;  %v3041_v63 = vadd.f32 %v1123_v2, %v1122_v52  ;;  %v1194_v3 = vld [vmem:[%s3816_s1 + $0xc0] sm:$0xf0] }
 0x125   : > { %v3051_v43 = vadd.f32 %v1130_v60, %v1129_v5  ;;  %v3053_v40 = vadd.f32 %v1137_v55, %v1136_v39  ;;  %v3055_v49 = vadd.f32 %v1144_v16, %v1143_v59  ;;  %v3058_v47 = vadd.f32 %v1068_v50, %v2883_v41  ;;  %v1200_v39 = vld [vmem:[%s3816_s1 + $0x1b0] sm:$0xf0]  ;;  %v1202_v59 = vld [vmem:[%s3816_s1 + $0x200] sm:$0xf0] }
 0x126   : > { %v3069_v11 = vadd.f32 %v1151_v54, %v1150_v28  ;;  %v3072_v52 = vadd.f32 %v1075_v35, %v2954_v14  ;;  %v3075_v41 = vadd.f32 %v1082_v27, %v2886_v6  ;;  %v3078_v5 = vadd.f32 %v1089_v38, %v2969_v51 }
 0x127   : > { %v3089_v14 = vadd.f32 %v1158_v8, %v1157_v30  ;;  %v3091_v42 = vadd.f32 %v1165_v10, %v1164_v61  ;;  %v3093_v6 = vadd.f32 %v1172_v36, %v1171_v26  ;;  %v1213_v51 = vsel %vm1212_vm5, %v1207_v25, %v3043_v48 }
 0x128   : > { %v1217_v17 = vmul.f32 %v1213_v51, %v1190_v29  ;;  %v1219_v18 = vmul.f32 %v1213_v51, %v1192_v15  ;;  %v1221_v44 = vmul.f32 %v1213_v51, %v1194_v3  ;;  %v1223_v1 = vmul.f32 %v1213_v51, %v1196_v24 }
 0x129   : > { %v1225_v45 = vmul.f32 %v1213_v51, %v1198_v37  ;;  %v1227_v56 = vmul.f32 %v1213_v51, %v1200_v39  ;;  %v1229_v28 = vmul.f32 %v1213_v51, %v1202_v59  ;;  %v1231_v20 = vmul.f32 %v1213_v51, %v1204_v53 }
 0x12a   : > { %v1249_v19 = vrot.slane %v1217_v17, 4  ;;  %v1251_v12 = vrot.slane %v1219_v18, 4  ;;  %v1253_v2 = vrot.slane %v1221_v44, 4  ;;  %v1255_v30 = vrot.slane %v1223_v1, 4 }
 0x12b   : > { %v1257_v50 = vrot.slane %v1225_v45, 4  ;;  %v1259_v61 = vrot.slane %v1227_v56, 4  ;;  %v1261_v60 = vrot.slane %v1229_v28, 4  ;;  %v1263_v26 = vrot.slane %v1231_v20, 4 }
 0x12c   : > { %v1281_v55 = vsel %vm274_vm0, %v1249_v19, 0.0  ;;  %v1295_v16 = vsel %vm274_vm0, %v1251_v12, 0.0  ;;  %v1309_v35 = vsel %vm274_vm0, %v1253_v2, 0.0  ;;  %v1323_v27 = vsel %vm274_vm0, %v1255_v30, 0.0 }
 0x12d   : > { %v1282_v38 = vrot.slane %v1281_v55, 4  ;;  %v1296_v54 = vrot.slane %v1295_v16, 4  ;;  %v1310_v8 = vrot.slane %v1309_v35, 4  ;;  %v1324_v10 = vrot.slane %v1323_v27, 4 }
 0x12e   : > { %v1337_v36 = vsel %vm274_vm0, %v1257_v50, 0.0  ;;  %v1351_v29 = vsel %vm274_vm0, %v1259_v61, 0.0  ;;  %v1365_v15 = vsel %vm274_vm0, %v1261_v60, 0.0  ;;  %v1379_v25 = vsel %vm274_vm0, %v1263_v26, 0.0 }
 0x12f   : > { %v1283_v3 = vadd.f32 %v1282_v38, %v1281_v55  ;;  %v1297_v24 = vadd.f32 %v1296_v54, %v1295_v16  ;;  %v1311_v37 = vadd.f32 %v1310_v8, %v1309_v35  ;;  %v1325_v39 = vadd.f32 %v1324_v10, %v1323_v27  ;;  %v1211_v16 = vpop.permute.xlu0 %1210 }
 0x130   : > { %v1338_v59 = vrot.slane %v1337_v36, 4  ;;  %v1352_v53 = vrot.slane %v1351_v29, 4  ;;  %v1366_v51 = vrot.slane %v1365_v15, 4  ;;  %v1380_v17 = vrot.slane %v1379_v25, 4 }
 0x131   : > { %v1284_v18 = vrot.slane %v1283_v3, 2  ;;  %v1298_v44 = vrot.slane %v1297_v24, 2  ;;  %v1312_v1 = vrot.slane %v1311_v37, 2  ;;  %v1326_v45 = vrot.slane %v1325_v39, 2 }
 0x132   : > { %v1339_v56 = vadd.f32 %v1338_v59, %v1337_v36  ;;  %v1353_v28 = vadd.f32 %v1352_v53, %v1351_v29  ;;  %v1367_v20 = vadd.f32 %v1366_v51, %v1365_v15  ;;  %v1381_v19 = vadd.f32 %v1380_v17, %v1379_v25  ;;  %v1199_v29 = vld [vmem:[%s3816_s1 + $0x168] sm:$0xf0] }
 0x133   : > { %v3107_v12 = vadd.f32 %v3033_v34, %v2902_v46  ;;  %v1285_v2 = vadd.f32 %v1284_v18, %v1283_v3  ;;  %v1299_v30 = vadd.f32 %v1298_v44, %v1297_v24  ;;  %v1313_v50 = vadd.f32 %v1312_v1, %v1311_v37 }
 0x134   : > { %v1340_v61 = vrot.slane %v1339_v56, 2  ;;  %v1354_v60 = vrot.slane %v1353_v28, 2  ;;  %v1368_v26 = vrot.slane %v1367_v20, 2  ;;  %v1382_v55 = vrot.slane %v1381_v19, 2 }
 0x135   : > { %v3111_v35 = vadd.f32 %v3035_v13, %v2972_v57  ;;  %v3115_v27 = vadd.f32 %v3037_v0, %v2905_v21  ;;  %v3119_v46 = vadd.f32 %v3039_v9, %v2975_v31  ;;  %v3123_v34 = vadd.f32 %v3041_v63, %v2926_v7  ;;  %v1191_v7 = vld [vmem:[%s3816_s1 + $0x28] sm:$0xf0] }
 0x136   : > { %v1286_v38 = vrot.slane %v1285_v2, 1  ;;  %v1300_v54 = vrot.slane %v1299_v30, 1  ;;  %v1314_v8 = vrot.slane %v1313_v50, 1  ;;  %v3125_v10 = vadd.f32 %v1326_v45, %v1325_v39 }
 0x137   : > { %v3129_v57 = vadd.f32 %v3051_v43, %v2990_v58  ;;  %v3133_v21 = vadd.f32 %v3053_v40, %v2929_v62  ;;  %v3137_v31 = vadd.f32 %v3055_v49, %v2993_v4  ;;  %v1214_v13 = vsel %vm1212_vm5, %v3043_v48, %v1211_v16  ;;  %v1193_v62 = vld [vmem:[%s3816_s1 + $0x78] sm:$0xf0]  ;;  %v1195_v4 = vld [vmem:[%s3816_s1 + $0xc8] sm:$0xf0] }
 0x138   : > { %v3144_v0 = vadd.f32 %v1340_v61, %v1339_v56  ;;  %v3146_v9 = vadd.f32 %v1354_v60, %v1353_v28  ;;  %v3148_v58 = vadd.f32 %v1368_v26, %v1367_v20  ;;  %v3150_v63 = vadd.f32 %v1382_v55, %v1381_v19  ;;  %v1197_v48 = vld [vmem:[%s3816_s1 + $0x118] sm:$0xf0] }
 0x139   : > { %v3163_v43 = vadd.f32 %v3069_v11, %v2932_v32  ;;  %v3167_v40 = vadd.f32 %v3089_v14, %v2996_v33  ;;  %v3171_v49 = vadd.f32 %v3091_v42, %v2935_v22  ;;  %v3175_v36 = vadd.f32 %v3093_v6, %v2999_v23  ;;  %v1201_v32 = vld [vmem:[%s3816_s1 + $0x1b8] sm:$0xf0]  ;;  %v1203_v23 = vld [vmem:[%s3816_s1 + $0x208] sm:$0xf0] }
 0x13a   : > { %v3183_v11 = vadd.f32 %v1286_v38, %v1285_v2  ;;  %v3185_v33 = vadd.f32 %v1300_v54, %v1299_v30  ;;  %v3187_v14 = vadd.f32 %v1314_v8, %v1313_v50  ;;  %v1328_v22 = vrot.slane %v3125_v10, 1  ;;  %v1205_v42 = vld [vmem:[%s3816_s1 + $0x258] sm:$0xf0] }
 0x13b   : > { %v1218_v6 = vmul.f32 %v1214_v13, %v1191_v7  ;;  %v1220_v15 = vmul.f32 %v1214_v13, %v1193_v62  ;;  %v1222_v25 = vmul.f32 %v1214_v13, %v1195_v4  ;;  %v1224_v3 = vmul.f32 %v1214_v13, %v1197_v48 }
 0x13c   : > { %v1342_v24 = vrot.slane %v3144_v0, 1  ;;  %v1356_v37 = vrot.slane %v3146_v9, 1  ;;  %v1370_v39 = vrot.slane %v3148_v58, 1  ;;  %v1384_v59 = vrot.slane %v3150_v63, 1 }
 0x13d   : > { %v1226_v53 = vmul.f32 %v1214_v13, %v1199_v29  ;;  %v1228_v51 = vmul.f32 %v1214_v13, %v1201_v32  ;;  %v1230_v17 = vmul.f32 %v1214_v13, %v1203_v23  ;;  %v1232_v18 = vmul.f32 %v1214_v13, %v1205_v42 }
 0x13e   : > { %v1250_v44 = vrot.slane %v1218_v6, 4  ;;  %v1252_v1 = vrot.slane %v1220_v15, 4  ;;  %v1254_v45 = vrot.slane %v1222_v25, 4  ;;  %v1256_v56 = vrot.slane %v1224_v3, 4  ;;  %v1426_v15 = vpop.permute.xlu1 %1425 }
 0x13f   : > { %v1258_v28 = vrot.slane %v1226_v53, 4  ;;  %v1260_v20 = vrot.slane %v1228_v51, 4  ;;  %v1262_v19 = vrot.slane %v1230_v17, 4  ;;  %v1264_v2 = vrot.slane %v1232_v18, 4 }
 0x140   : > { %v1288_v30 = vsel %vm274_vm0, %v1250_v44, 0.0  ;;  %v1302_v50 = vsel %vm274_vm0, %v1252_v1, 0.0  ;;  %v1316_v61 = vsel %vm274_vm0, %v1254_v45, 0.0  ;;  %v1330_v60 = vsel %vm274_vm0, %v1256_v56, 0.0 }
 0x141   : > { %v1289_v26 = vrot.slane %v1288_v30, 4  ;;  %v1303_v55 = vrot.slane %v1302_v50, 4  ;;  %v1317_v16 = vrot.slane %v1316_v61, 4  ;;  %v1331_v38 = vrot.slane %v1330_v60, 4 }
 0x142   : > { %v1344_v54 = vsel %vm274_vm0, %v1258_v28, 0.0  ;;  %v1358_v8 = vsel %vm274_vm0, %v1260_v20, 0.0  ;;  %v1372_v7 = vsel %vm274_vm0, %v1262_v19, 0.0  ;;  %v1386_v13 = vsel %vm274_vm0, %v1264_v2, 0.0 }
 0x143   : > { %v1290_v62 = vadd.f32 %v1289_v26, %v1288_v30  ;;  %v1304_v4 = vadd.f32 %v1303_v55, %v1302_v50  ;;  %v1318_v48 = vadd.f32 %v1317_v16, %v1316_v61  ;;  %v1332_v29 = vadd.f32 %v1331_v38, %v1330_v60 }
 0x144   : > { %v1345_v32 = vrot.slane %v1344_v54, 4  ;;  %v1359_v23 = vrot.slane %v1358_v8, 4  ;;  %v1373_v42 = vrot.slane %v1372_v7, 4  ;;  %v1387_v6 = vrot.slane %v1386_v13, 4 }
 0x145   : > { %v1291_v25 = vrot.slane %v1290_v62, 2  ;;  %v1305_v3 = vrot.slane %v1304_v4, 2  ;;  %v1319_v53 = vrot.slane %v1318_v48, 2  ;;  %v1333_v51 = vrot.slane %v1332_v29, 2 }
 0x146   : > { %v1346_v17 = vadd.f32 %v1345_v32, %v1344_v54  ;;  %v1360_v18 = vadd.f32 %v1359_v23, %v1358_v8  ;;  %v1374_v44 = vadd.f32 %v1373_v42, %v1372_v7  ;;  %v1388_v1 = vadd.f32 %v1387_v6, %v1386_v13  ;;  %v1414_v32 = vld [vmem:[%s3816_s1 + $0xd8] sm:$0xf]  ;;  %v1415_v23 = vld [vmem:[%s3816_s1 + $0x120] sm:$0xf] }
 0x147   : > { %v1292_v45 = vadd.f32 %v1291_v25, %v1290_v62  ;;  %v1306_v56 = vadd.f32 %v1305_v3, %v1304_v4  ;;  %v1320_v28 = vadd.f32 %v1319_v53, %v1318_v48  ;;  %v1334_v20 = vadd.f32 %v1333_v51, %v1332_v29  ;;  %v1413_v29 = vld [vmem:[%s3816_s1 + $0xd0] sm:$0xf]  ;;  %v1416_v53 = vld [vmem:[%s3816_s1 + $0x128] sm:$0xf] }
 0x148   : > { %v1347_v19 = vrot.slane %v1346_v17, 2  ;;  %v1361_v2 = vrot.slane %v1360_v18, 2  ;;  %v1375_v30 = vrot.slane %v1374_v44, 2  ;;  %v1389_v50 = vrot.slane %v1388_v1, 2 }
 0x149   : > { %v1329_v61 = vadd.f32 %v1328_v22, %v3125_v10  ;;  %v1343_v60 = vadd.f32 %v1342_v24, %v3144_v0  ;;  %v1357_v26 = vadd.f32 %v1356_v37, %v3146_v9  ;;  %v1293_v55 = vrot.slane %v1292_v45, 1  ;;  %v1430_v0 = vpop.permute.xlu1 %1429  ;;  %v1428_v9 = vpop.permute.xlu0 %1427 }
 0x14a   : > { %v1307_v16 = vrot.slane %v1306_v56, 1  ;;  %v1321_v38 = vrot.slane %v1320_v28, 1  ;;  %v1335_v54 = vrot.slane %v1334_v20, 1  ;;  %v1348_v8 = vadd.f32 %v1347_v19, %v1346_v17 }
 0x14b   : > { %v1371_v7 = vadd.f32 %v1370_v39, %v3148_v58  ;;  %v1385_v13 = vadd.f32 %v1384_v59, %v3150_v63  ;;  %v3215_v62 = vadd.f32 %v3183_v11, %v3058_v47  ;;  %v3219_v10 = vadd.f32 %v3185_v33, %v3075_v41  ;;  %v1409_v41 = vld [vmem:[%s3816_s1 + $0x30] sm:$0xf]  ;;  %v1410_v11 = vld [vmem:[%s3816_s1 + $0x38] sm:$0xf] }
 0x14c   : > { %v1294_v22 = vadd.f32 %v1293_v55, %v1292_v45  ;;  %v1362_v24 = vadd.f32 %v1361_v2, %v1360_v18  ;;  %v1376_v37 = vadd.f32 %v1375_v30, %v1374_v44  ;;  %v1390_v4 = vadd.f32 %v1389_v50, %v1388_v1 }
 0x14d   : > { %v3223_v48 = vadd.f32 %v3187_v14, %v3107_v12  ;;  %v3226_v58 = vadd.f32 %v1329_v61, %v3115_v27  ;;  %v3229_v47 = vadd.f32 %v1343_v60, %v3123_v34  ;;  %v3232_v63 = vadd.f32 %v1357_v26, %v3133_v21  ;;  %v1411_v27 = vld [vmem:[%s3816_s1 + $0x80] sm:$0xf]  ;;  %v1412_v34 = vld [vmem:[%s3816_s1 + $0x88] sm:$0xf]  ;;  %v1599_v44 = vpop.permute.xlu1 %1598  ;;  %v1597_v1 = vpop.permute.xlu0 %1596 }
 0x14e   : > { %v1308_v33 = vadd.f32 %v1307_v16, %v1306_v56  ;;  %v1322_v12 = vadd.f32 %v1321_v38, %v1320_v28  ;;  %v1336_v14 = vadd.f32 %v1335_v54, %v1334_v20  ;;  %v1349_v39 = vrot.slane %v1348_v8, 1 }
 0x14f   : > { %v3247_v21 = vadd.f32 %v1371_v7, %v3163_v43  ;;  %v3250_v59 = vadd.f32 %v1385_v13, %v3171_v49  ;;  %v3262_v42 = vsel %vm1431_vm6, %v1426_v15, %v1428_v9  ;;  %v3265_v43 = vsel %vm1431_vm6, %v1428_v9, %v1430_v0 }
 0x150   : > { %v1363_v49 = vrot.slane %v1362_v24, 1  ;;  %v1377_v6 = vrot.slane %v1376_v37, 1  ;;  %v1391_v25 = vrot.slane %v1390_v4, 1  ;;  %v3268_v3 = vadd.f32 %v1294_v22, %v3072_v52 }
 0x151   : > { %v1436_v51 = vmul.f32 %v3262_v42, %v1409_v41  ;;  %v1437_v17 = vmul.f32 %v3265_v43, %v1410_v11  ;;  %v1438_v15 = vmul.f32 %v3262_v42, %v1411_v27  ;;  %v1439_v18 = vmul.f32 %v3265_v43, %v1412_v34  ;;  %v1601_v22 = vpop.permute.xlu0 %1600 }
 0x152   : > { %v1350_v45 = vadd.f32 %v1349_v39, %v1348_v8  ;;  %v3278_v56 = vadd.f32 %v1308_v33, %v3078_v5  ;;  %v3281_v52 = vadd.f32 %v1322_v12, %v3111_v35  ;;  %v3284_v28 = vadd.f32 %v1336_v14, %v3119_v46  ;;  %v1417_v39 = vld [vmem:[%s3816_s1 + $0x170] sm:$0xf] }
 0x153   : > { %v1440_v20 = vmul.f32 %v3262_v42, %v1413_v29  ;;  %v1441_v19 = vmul.f32 %v3265_v43, %v1414_v32  ;;  %v1442_v2 = vmul.f32 %v3262_v42, %v1415_v23  ;;  %v1443_v30 = vmul.f32 %v3265_v43, %v1416_v53  ;;  %v1418_v23 = vld [vmem:[%s3816_s1 + $0x178] sm:$0xf] }
 0x154   : > { %v1364_v50 = vadd.f32 %v1363_v49, %v1362_v24  ;;  %v1378_v61 = vadd.f32 %v1377_v6, %v1376_v37  ;;  %v1392_v60 = vadd.f32 %v1391_v25, %v1390_v4  ;;  %v3291_v5 = vsel %vm1602_vm7, %v1597_v1, %v1599_v44  ;;  %v1419_v49 = vld [vmem:[%s3816_s1 + $0x1c0] sm:$0xf]  ;;  %v1420_v6 = vld [vmem:[%s3816_s1 + $0x1c8] sm:$0xf] }
 0x155   : > { %v1452_v35 = vsel %vm274_vm0, %v1436_v51, 0.0  ;;  %v1459_v26 = vsel %vm274_vm0, %v1437_v17, 0.0  ;;  %v1466_v46 = vsel %vm274_vm0, %v1438_v15, 0.0  ;;  %v1473_v55 = vsel %vm274_vm0, %v1439_v18, 0.0 }
 0x156   : > { %v1453_v16 = vrot.slane %v1452_v35, 4  ;;  %v1460_v38 = vrot.slane %v1459_v26, 4  ;;  %v1467_v54 = vrot.slane %v1466_v46, 4  ;;  %v1474_v8 = vrot.slane %v1473_v55, 4 }
 0x157   : > { %v1480_v7 = vsel %vm274_vm0, %v1440_v20, 0.0  ;;  %v1487_v13 = vsel %vm274_vm0, %v1441_v19, 0.0  ;;  %v1494_v0 = vsel %vm274_vm0, %v1442_v2, 0.0  ;;  %v1501_v9 = vsel %vm274_vm0, %v1443_v30, 0.0  ;;  %v1421_v20 = vld [vmem:[%s3816_s1 + $0x210] sm:$0xf] }
 0x158   : > { %v1454_v24 = vadd.f32 %v1453_v16, %v1452_v35  ;;  %v1461_v37 = vadd.f32 %v1460_v38, %v1459_v26  ;;  %v1468_v4 = vadd.f32 %v1467_v54, %v1466_v46  ;;  %v1475_v41 = vadd.f32 %v1474_v8, %v1473_v55  ;;  %v1422_v19 = vld [vmem:[%s3816_s1 + $0x218] sm:$0xf] }
 0x159   : > { %v1481_v11 = vrot.slane %v1480_v7, 4  ;;  %v1488_v33 = vrot.slane %v1487_v13, 4  ;;  %v1495_v12 = vrot.slane %v1494_v0, 4  ;;  %v1502_v14 = vrot.slane %v1501_v9, 4 }
 0x15a   : > { %v1455_v27 = vrot.slane %v1454_v24, 2  ;;  %v1462_v34 = vrot.slane %v1461_v37, 2  ;;  %v1469_v29 = vrot.slane %v1468_v4, 2  ;;  %v3305_v32 = vsel %vm1602_vm7, %v1599_v44, %v1601_v22 }
 0x15b   : > { %3822 = vst [vmem:[#allocation2_spill] sm:$0xff] %v3305_v32  ;;  %v1482_v25 = vadd.f32 %v1481_v11, %v1480_v7  ;;  %v1489_v53 = vadd.f32 %v1488_v33, %v1487_v13  ;;  %v1496_v51 = vadd.f32 %v1495_v12, %v1494_v0  ;;  %v1503_v17 = vadd.f32 %v1502_v14, %v1501_v9 }
 0x15c   : > { %v3317_v15 = vadd.f32 %v1350_v45, %v3129_v57  ;;  %v3320_v18 = vadd.f32 %v1364_v50, %v3137_v31  ;;  %v3323_v44 = vadd.f32 %v1378_v61, %v3167_v40  ;;  %v3326_v1 = vadd.f32 %v1392_v60, %v3175_v36  ;;  %v1423_v57 = vld [vmem:[%s3816_s1 + $0x260] sm:$0xf]  ;;  %v1424_v31 = vld [vmem:[%s3816_s1 + $0x268] sm:$0xf] }
 0x15d   : > { %v3340_v40 = vadd.f32 %v1455_v27, %v1454_v24  ;;  %v3342_v36 = vadd.f32 %v1462_v34, %v1461_v37  ;;  %v3344_v45 = vadd.f32 %v1469_v29, %v1468_v4  ;;  %v1476_v2 = vrot.slane %v1475_v41, 2 }
 0x15e   : > { %v1444_v30 = vmul.f32 %v3262_v42, %v1417_v39  ;;  %v1445_v50 = vmul.f32 %v3265_v43, %v1418_v23  ;;  %v1446_v61 = vmul.f32 %v3262_v42, %v1419_v49  ;;  %v1447_v60 = vmul.f32 %v3265_v43, %v1420_v6 }
 0x15f   : > { %v1483_v35 = vrot.slane %v1482_v25, 2  ;;  %v1490_v26 = vrot.slane %v1489_v53, 2  ;;  %v1497_v46 = vrot.slane %v1496_v51, 2  ;;  %v1504_v55 = vrot.slane %v1503_v17, 2 }
 0x160   : > { %v1448_v16 = vmul.f32 %v3262_v42, %v1421_v20  ;;  %v1449_v38 = vmul.f32 %v3265_v43, %v1422_v19  ;;  %v1450_v54 = vmul.f32 %v3262_v42, %v1423_v57  ;;  %v1451_v8 = vmul.f32 %v3265_v43, %v1424_v31 }
 0x161   : > { %v1457_v7 = vrot.slane %v3340_v40, 1  ;;  %v1464_v13 = vrot.slane %v3342_v36, 1  ;;  %v1471_v0 = vrot.slane %v3344_v45, 1  ;;  %v1477_v9 = vadd.f32 %v1476_v2, %v1475_v41 }
 0x162   : > { %v1508_v22 = vsel %vm274_vm0, %v1444_v30, 0.0  ;;  %v1515_v24 = vsel %vm274_vm0, %v1445_v50, 0.0  ;;  %v1522_v37 = vsel %vm274_vm0, %v1446_v61, 0.0  ;;  %v1529_v4 = vsel %vm274_vm0, %v1447_v60, 0.0 }
 0x163   : > { %v1484_v11 = vadd.f32 %v1483_v35, %v1482_v25  ;;  %v1491_v33 = vadd.f32 %v1490_v26, %v1489_v53  ;;  %v1498_v42 = vadd.f32 %v1497_v46, %v1496_v51  ;;  %v1505_v12 = vadd.f32 %v1504_v55, %v1503_v17 }
 0x164   : > { %v1509_v43 = vrot.slane %v1508_v22, 4  ;;  %v1516_v14 = vrot.slane %v1515_v24, 4  ;;  %v1523_v39 = vrot.slane %v1522_v37, 4  ;;  %v1530_v27 = vrot.slane %v1529_v4, 4 }
 0x165   : > { %v1536_v34 = vsel %vm274_vm0, %v1448_v16, 0.0  ;;  %v1543_v41 = vsel %vm274_vm0, %v1449_v38, 0.0  ;;  %v1550_v29 = vsel %vm274_vm0, %v1450_v54, 0.0  ;;  %v1557_v23 = vsel %vm274_vm0, %v1451_v8, 0.0 }
 0x166   : > { %v1510_v49 = vadd.f32 %v1509_v43, %v1508_v22  ;;  %v1517_v6 = vadd.f32 %v1516_v14, %v1515_v24  ;;  %v1524_v20 = vadd.f32 %v1523_v39, %v1522_v37  ;;  %v1531_v19 = vadd.f32 %v1530_v27, %v1529_v4 }
 0x167   : > { %v1537_v25 = vrot.slane %v1536_v34, 4  ;;  %v1544_v53 = vrot.slane %v1543_v41, 4  ;;  %v1551_v51 = vrot.slane %v1550_v29, 4  ;;  %v1558_v17 = vrot.slane %v1557_v23, 4 }
 0x168   : > { %v1511_v57 = vrot.slane %v1510_v49, 2  ;;  %v1518_v31 = vrot.slane %v1517_v6, 2  ;;  %v1525_v2 = vrot.slane %v1524_v20, 2  ;;  %v1532_v30 = vrot.slane %v1531_v19, 2 }
 0x169   : > { %v1538_v50 = vadd.f32 %v1537_v25, %v1536_v34  ;;  %v1545_v61 = vadd.f32 %v1544_v53, %v1543_v41  ;;  %v1552_v60 = vadd.f32 %v1551_v51, %v1550_v29  ;;  %v1559_v35 = vadd.f32 %v1558_v17, %v1557_v23 }
 0x16a   : > { %v1512_v26 = vadd.f32 %v1511_v57, %v1510_v49  ;;  %v1519_v46 = vadd.f32 %v1518_v31, %v1517_v6  ;;  %v1526_v55 = vadd.f32 %v1525_v2, %v1524_v20  ;;  %v1533_v16 = vadd.f32 %v1532_v30, %v1531_v19 }
 0x16b   : > { %v1539_v38 = vrot.slane %v1538_v50, 2  ;;  %v1546_v54 = vrot.slane %v1545_v61, 2  ;;  %v1553_v8 = vrot.slane %v1552_v60, 2  ;;  %v1560_v22 = vrot.slane %v1559_v35, 2 }
 0x16c   : > { %v1478_v24 = vrot.slane %v1477_v9, 1  ;;  %v1485_v37 = vrot.slane %v1484_v11, 1  ;;  %v1492_v4 = vrot.slane %v1491_v33, 1  ;;  %v1499_v43 = vrot.slane %v1498_v42, 1 }
 0x16d   : > { %v1506_v14 = vrot.slane %v1505_v12, 1  ;;  %v1540_v39 = vadd.f32 %v1539_v38, %v1538_v50  ;;  %v1547_v27 = vadd.f32 %v1546_v54, %v1545_v61  ;;  %v1554_v32 = vadd.f32 %v1553_v8, %v1552_v60 }
 0x16e   : > { %v1513_v34 = vrot.slane %v1512_v26, 1  ;;  %v1520_v41 = vrot.slane %v1519_v46, 1  ;;  %v1527_v29 = vrot.slane %v1526_v55, 1  ;;  %v1534_v23 = vrot.slane %v1533_v16, 1 }
 0x16f   : > { %v1458_v49 = vadd.f32 %v1457_v7, %v3340_v40  ;;  %v1465_v6 = vadd.f32 %v1464_v13, %v3342_v36  ;;  %v1472_v20 = vadd.f32 %v1471_v0, %v3344_v45  ;;  %v3368_v19 = vadd.f32 %v1560_v22, %v1559_v35  ;;  %v1580_v40 = vld [vmem:[%s3816_s1 + $0x30] sm:$0xf0]  ;;  %v1582_v36 = vld [vmem:[%s3816_s1 + $0x80] sm:$0xf0] }
 0x170   : > { %v1479_v25 = vadd.f32 %v1478_v24, %v1477_v9  ;;  %v1541_v53 = vrot.slane %v1540_v39, 1  ;;  %v1548_v51 = vrot.slane %v1547_v27, 1  ;;  %v1555_v17 = vrot.slane %v1554_v32, 1  ;;  %v1584_v45 = vld [vmem:[%s3816_s1 + $0xd0] sm:$0xf0] }
 0x171   : > { %v3370_v57 = vadd.f32 %v1485_v37, %v1484_v11  ;;  %v3372_v31 = vadd.f32 %v1492_v4, %v1491_v33  ;;  %v3374_v2 = vadd.f32 %v1499_v43, %v1498_v42  ;;  %v3376_v30 = vadd.f32 %v1506_v14, %v1505_v12  ;;  %v1586_v11 = vld [vmem:[%s3816_s1 + $0x120] sm:$0xf0]  ;;  %v1588_v33 = vld [vmem:[%s3816_s1 + $0x170] sm:$0xf0] }
 0x172   : > { %v3387_v7 = vadd.f32 %v1513_v34, %v1512_v26  ;;  %v3389_v13 = vadd.f32 %v1520_v41, %v1519_v46  ;;  %v3391_v0 = vadd.f32 %v1527_v29, %v1526_v55  ;;  %v3393_v9 = vadd.f32 %v1534_v23, %v1533_v16  ;;  %v1590_v42 = vld [vmem:[%s3816_s1 + $0x1c0] sm:$0xf0]  ;;  %v1592_v35 = vld [vmem:[%s3816_s1 + $0x210] sm:$0xf0] }
 0x173   : > { %v1562_v12 = vrot.slane %v3368_v19, 1  ;;  %v3406_v50 = vadd.f32 %v1458_v49, %v3215_v62  ;;  %v3409_v61 = vadd.f32 %v1465_v6, %v3268_v3  ;;  %v3412_v60 = vadd.f32 %v1472_v20, %v3219_v10  ;;  %v1594_v26 = vld [vmem:[%s3816_s1 + $0x260] sm:$0xf0] }
 0x174   : > { %v3420_v46 = vadd.f32 %v1541_v53, %v1540_v39  ;;  %v3422_v55 = vadd.f32 %v1548_v51, %v1547_v27  ;;  %v3424_v62 = vadd.f32 %v1555_v17, %v1554_v32  ;;  %v3427_v3 = vadd.f32 %v1479_v25, %v3278_v56 }
 0x175   : > { %v1607_v10 = vmul.f32 %v3291_v5, %v1580_v40  ;;  %v1609_v16 = vmul.f32 %v3291_v5, %v1582_v36  ;;  %v1611_v38 = vmul.f32 %v3291_v5, %v1584_v45  ;;  %v1613_v54 = vmul.f32 %v3291_v5, %v1586_v11 }
 0x176   : > { %v1615_v8 = vmul.f32 %v3291_v5, %v1588_v33  ;;  %v1617_v22 = vmul.f32 %v3291_v5, %v1590_v42  ;;  %v1619_v24 = vmul.f32 %v3291_v5, %v1592_v35  ;;  %v1621_v32 = vmul.f32 %v3291_v5, %v1594_v26 }
 0x177   : > { %v1639_v37 = vrot.slane %v1607_v10, 4  ;;  %v1641_v4 = vrot.slane %v1609_v16, 4  ;;  %v1643_v56 = vrot.slane %v1611_v38, 4  ;;  %v1645_v43 = vrot.slane %v1613_v54, 4 }
 0x178   : > { %v1647_v14 = vrot.slane %v1615_v8, 4  ;;  %v1649_v39 = vrot.slane %v1617_v22, 4  ;;  %v1651_v27 = vrot.slane %v1619_v24, 4  ;;  %v1653_v34 = vrot.slane %v1621_v32, 4 }
 0x179   : > { %v1671_v41 = vsel %vm274_vm0, %v1639_v37, 0.0  ;;  %v1685_v29 = vsel %vm274_vm0, %v1641_v4, 0.0  ;;  %v1699_v23 = vsel %vm274_vm0, %v1643_v56, 0.0  ;;  %v1713_v49 = vsel %vm274_vm0, %v1645_v43, 0.0 }
 0x17a   : > { %v1672_v6 = vrot.slane %v1671_v41, 4  ;;  %v1686_v20 = vrot.slane %v1685_v29, 4  ;;  %v1700_v25 = vrot.slane %v1699_v23, 4  ;;  %v1714_v5 = vrot.slane %v1713_v49, 4 }
 0x17b   : > { %v1727_v53 = vsel %vm274_vm0, %v1647_v14, 0.0  ;;  %v1741_v51 = vsel %vm274_vm0, %v1649_v39, 0.0  ;;  %v1755_v17 = vsel %vm274_vm0, %v1651_v27, 0.0  ;;  %v1769_v40 = vsel %vm274_vm0, %v1653_v34, 0.0 }
 0x17c   : > { %v1673_v36 = vadd.f32 %v1672_v6, %v1671_v41  ;;  %v1687_v45 = vadd.f32 %v1686_v20, %v1685_v29  ;;  %v1701_v11 = vadd.f32 %v1700_v25, %v1699_v23  ;;  %v1715_v33 = vadd.f32 %v1714_v5, %v1713_v49  ;;  %v1589_v5 = vld [vmem:[%s3816_s1 + $0x178] sm:$0xf0] }
 0x17d   : > { %v1728_v42 = vrot.slane %v1727_v53, 4  ;;  %v1742_v35 = vrot.slane %v1741_v51, 4  ;;  %v1756_v26 = vrot.slane %v1755_v17, 4  ;;  %v1770_v10 = vrot.slane %v1769_v40, 4 }
 0x17e   : > { %v1674_v16 = vrot.slane %v1673_v36, 2  ;;  %v1688_v38 = vrot.slane %v1687_v45, 2  ;;  %v1702_v54 = vrot.slane %v1701_v11, 2  ;;  %v1716_v8 = vrot.slane %v1715_v33, 2 }
 0x17f   : > { %v1729_v22 = vadd.f32 %v1728_v42, %v1727_v53  ;;  %v1743_v24 = vadd.f32 %v1742_v35, %v1741_v51  ;;  %v1757_v32 = vadd.f32 %v1756_v26, %v1755_v17  ;;  %v1771_v37 = vadd.f32 %v1770_v10, %v1769_v40 }
 0x180   : > { %v1563_v4 = vadd.f32 %v1562_v12, %v3368_v19  ;;  %v1675_v56 = vadd.f32 %v1674_v16, %v1673_v36  ;;  %v1689_v43 = vadd.f32 %v1688_v38, %v1687_v45  ;;  %v1703_v14 = vadd.f32 %v1702_v54, %v1701_v11 }
 0x181   : > { %v1730_v39 = vrot.slane %v1729_v22, 2  ;;  %v1744_v27 = vrot.slane %v1743_v24, 2  ;;  %v1758_v34 = vrot.slane %v1757_v32, 2  ;;  %v1772_v41 = vrot.slane %v1771_v37, 2 }
 0x182   : > { %v3448_v29 = vadd.f32 %v3370_v57, %v3223_v48  ;;  %v3452_v23 = vadd.f32 %v3372_v31, %v3281_v52  ;;  %v3456_v49 = vadd.f32 %v3374_v2, %v3226_v58  ;;  %v3460_v19 = vadd.f32 %v3376_v30, %v3284_v28  ;;  %v1581_v57 = vld [vmem:[%s3816_s1 + $0x38] sm:$0xf0]  ;;  %v1587_v30 = vld [vmem:[%s3816_s1 + $0x128] sm:$0xf0] }
 0x183   : > { %v1676_v12 = vrot.slane %v1675_v56, 1  ;;  %v1690_v6 = vrot.slane %v1689_v43, 1  ;;  %v1704_v20 = vrot.slane %v1703_v14, 1  ;;  %v3462_v25 = vadd.f32 %v1716_v8, %v1715_v33 }
 0x184   : > { %v3466_v48 = vadd.f32 %v3387_v7, %v3229_v47  ;;  %v3470_v52 = vadd.f32 %v3389_v13, %v3317_v15  ;;  %v3474_v58 = vadd.f32 %v3391_v0, %v3232_v63  ;;  %v3478_v28 = vadd.f32 %v3393_v9, %v3320_v18  ;;  %v1583_v63 = vld [vmem:[%s3816_s1 + $0x88] sm:$0xf0]  ;;  %v1585_v18 = vld [vmem:[%s3816_s1 + $0xd8] sm:$0xf0] }
 0x185   : > { %v3483_v31 = vadd.f32 %v1730_v39, %v1729_v22  ;;  %v3485_v47 = vadd.f32 %v1744_v27, %v1743_v24  ;;  %v3487_v2 = vadd.f32 %v1758_v34, %v1757_v32  ;;  %v3489_v15 = vadd.f32 %v1772_v41, %v1771_v37 }
 0x186   : > { %v3502_v7 = vadd.f32 %v3420_v46, %v3247_v21  ;;  %v3506_v13 = vadd.f32 %v3422_v55, %v3323_v44  ;;  %v3510_v0 = vadd.f32 %v3424_v62, %v3250_v59  ;;  %v3513_v9 = vadd.f32 %v1563_v4, %v3326_v1  ;;  %v1591_v21 = vld [vmem:[%s3816_s1 + $0x1c8] sm:$0xf0]  ;;  %v1593_v1 = vld [vmem:[%s3816_s1 + $0x218] sm:$0xf0]  ;;  %v3823_v62 = vld [vmem:[#allocation2_spill] sm:$0xff] }
 0x187   : > { %v3521_v46 = vadd.f32 %v1676_v12, %v1675_v56  ;;  %v3523_v53 = vadd.f32 %v1690_v6, %v1689_v43  ;;  %v3525_v44 = vadd.f32 %v1704_v20, %v1703_v14  ;;  %v1718_v59 = vrot.slane %v3462_v25, 1  ;;  %v1595_v55 = vld [vmem:[%s3816_s1 + $0x268] sm:$0xf0] }
 0x188   : > { %v1608_v51 = vmul.f32 %v3823_v62, %v1581_v57  ;;  %v1610_v17 = vmul.f32 %v3823_v62, %v1583_v63  ;;  %v1612_v40 = vmul.f32 %v3823_v62, %v1585_v18  ;;  %v1614_v36 = vmul.f32 %v3823_v62, %v1587_v30 }
 0x189   : > { %v1732_v45 = vrot.slane %v3483_v31, 1  ;;  %v1746_v11 = vrot.slane %v3485_v47, 1  ;;  %v1760_v33 = vrot.slane %v3487_v2, 1  ;;  %v1616_v35 = vmul.f32 %v3823_v62, %v1589_v5 }
 0x18a   : > { %v1618_v26 = vmul.f32 %v3823_v62, %v1591_v21  ;;  %v1620_v10 = vmul.f32 %v3823_v62, %v1593_v1  ;;  %v1622_v16 = vmul.f32 %v3823_v62, %v1595_v55  ;;  %v1640_v38 = vrot.slane %v1608_v51, 4 }
 0x18b   : > { %v1642_v54 = vrot.slane %v1610_v17, 4  ;;  %v1644_v8 = vrot.slane %v1612_v40, 4  ;;  %v1646_v22 = vrot.slane %v1614_v36, 4  ;;  %v1648_v24 = vrot.slane %v1616_v35, 4 }
 0x18c   : > { %v1650_v32 = vrot.slane %v1618_v26, 4  ;;  %v1652_v37 = vrot.slane %v1620_v10, 4  ;;  %v1654_v4 = vrot.slane %v1622_v16, 4  ;;  %v1678_v56 = vsel %vm274_vm0, %v1640_v38, 0.0 }
 0x18d   : > { %v1692_v43 = vsel %vm274_vm0, %v1642_v54, 0.0  ;;  %v1706_v14 = vsel %vm274_vm0, %v1644_v8, 0.0  ;;  %v1720_v39 = vsel %vm274_vm0, %v1646_v22, 0.0  ;;  %v1679_v27 = vrot.slane %v1678_v56, 4 }
 0x18e   : > { %v1693_v34 = vrot.slane %v1692_v43, 4  ;;  %v1707_v41 = vrot.slane %v1706_v14, 4  ;;  %v1721_v12 = vrot.slane %v1720_v39, 4  ;;  %v1734_v6 = vsel %vm274_vm0, %v1648_v24, 0.0 }
 0x18f   : > { %v1748_v20 = vsel %vm274_vm0, %v1650_v32, 0.0  ;;  %v1762_v57 = vsel %vm274_vm0, %v1652_v37, 0.0  ;;  %v1776_v63 = vsel %vm274_vm0, %v1654_v4, 0.0  ;;  %v1680_v18 = vadd.f32 %v1679_v27, %v1678_v56 }
 0x190   : > { %v1694_v30 = vadd.f32 %v1693_v34, %v1692_v43  ;;  %v1708_v5 = vadd.f32 %v1707_v41, %v1706_v14  ;;  %v1722_v21 = vadd.f32 %v1721_v12, %v1720_v39  ;;  %v1735_v1 = vrot.slane %v1734_v6, 4 }
 0x191   : > { %v1749_v55 = vrot.slane %v1748_v20, 4  ;;  %v1763_v62 = vrot.slane %v1762_v57, 4  ;;  %v1777_v51 = vrot.slane %v1776_v63, 4  ;;  %v1681_v17 = vrot.slane %v1680_v18, 2 }
 0x192   : > { %v1695_v40 = vrot.slane %v1694_v30, 2  ;;  %v1709_v36 = vrot.slane %v1708_v5, 2  ;;  %v1723_v35 = vrot.slane %v1722_v21, 2  ;;  %v1736_v26 = vadd.f32 %v1735_v1, %v1734_v6 }
 0x193   : > { %v1750_v10 = vadd.f32 %v1749_v55, %v1748_v20  ;;  %v1764_v16 = vadd.f32 %v1763_v62, %v1762_v57  ;;  %v1778_v38 = vadd.f32 %v1777_v51, %v1776_v63  ;;  %v1682_v54 = vadd.f32 %v1681_v17, %v1680_v18  ;;  %v1816_v18 = vpop.permute.xlu1 %1815 }
 0x194   : > { %v1696_v8 = vadd.f32 %v1695_v40, %v1694_v30  ;;  %v1710_v22 = vadd.f32 %v1709_v36, %v1708_v5  ;;  %v1724_v24 = vadd.f32 %v1723_v35, %v1722_v21  ;;  %v1737_v32 = vrot.slane %v1736_v26, 2 }
 0x195   : > { %v1751_v37 = vrot.slane %v1750_v10, 2  ;;  %v1765_v4 = vrot.slane %v1764_v16, 2  ;;  %v1779_v56 = vrot.slane %v1778_v38, 2  ;;  %v1683_v43 = vrot.slane %v1682_v54, 1 }
 0x196   : > { %v1697_v14 = vrot.slane %v1696_v8, 1  ;;  %v1711_v39 = vrot.slane %v1710_v22, 1  ;;  %v1725_v27 = vrot.slane %v1724_v24, 1  ;;  %v1738_v34 = vadd.f32 %v1737_v32, %v1736_v26  ;;  %v1806_v32 = vld [vmem:[%s3816_s1 + $0x138] sm:$0xf] }
 0x197   : > { %v1752_v41 = vadd.f32 %v1751_v37, %v1750_v10  ;;  %v1766_v12 = vadd.f32 %v1765_v4, %v1764_v16  ;;  %v1780_v42 = vadd.f32 %v1779_v56, %v1778_v38  ;;  %v1719_v6 = vadd.f32 %v1718_v59, %v3462_v25  ;;  %v1802_v16 = vld [vmem:[%s3816_s1 + $0x98] sm:$0xf]  ;;  %v1803_v38 = vld [vmem:[%s3816_s1 + $0xe0] sm:$0xf] }
 0x198   : > { %v1733_v20 = vadd.f32 %v1732_v45, %v3483_v31  ;;  %v1747_v57 = vadd.f32 %v1746_v11, %v3485_v47  ;;  %v1761_v63 = vadd.f32 %v1760_v33, %v3487_v2  ;;  %v1739_v30 = vrot.slane %v1738_v34, 1 }
 0x199   : > { %v1753_v5 = vrot.slane %v1752_v41, 1  ;;  %v1767_v21 = vrot.slane %v1766_v12, 1  ;;  %v1781_v1 = vrot.slane %v1780_v42, 1  ;;  %v3824_v55 = vrot.slane %v3489_v15, 1 }
 0x19a   : > { %v1684_v51 = vadd.f32 %v1683_v43, %v1682_v54  ;;  %v1698_v17 = vadd.f32 %v1697_v14, %v1696_v8  ;;  %v1712_v40 = vadd.f32 %v1711_v39, %v1710_v22  ;;  %v3565_v25 = vadd.f32 %v3521_v46, %v3406_v50  ;;  %v3581_v50 = vld [vmem:[%s3817_s2] sm:$0xff]  ;;  %v1808_v14 = vld [vmem:[%s3816_s1 + $0x188] sm:$0xf] }
 0x19b   : > { %v1775_v62 = vadd.f32 %v3824_v55, %v3489_v15  ;;  %v3569_v31 = vadd.f32 %v3523_v53, %v3412_v60  ;;  %v3573_v47 = vadd.f32 %v3525_v44, %v3448_v29  ;;  %v1726_v2 = vadd.f32 %v1725_v27, %v1724_v24  ;;  %v3586_v60 = vld [vmem:[%s3817_s2 + $0x8] sm:$0xff]  ;;  %v1805_v24 = vld [vmem:[%s3816_s1 + $0x130] sm:$0xf]  ;;  %v1807_v43 = vld [vmem:[%s3816_s1 + $0x180] sm:$0xf] }
 0x19c   : > { %v3576_v59 = vadd.f32 %v1719_v6, %v3456_v49  ;;  %v1740_v15 = vadd.f32 %v1739_v30, %v1738_v34  ;;  %v1754_v45 = vadd.f32 %v1753_v5, %v1752_v41  ;;  %v1768_v11 = vadd.f32 %v1767_v21, %v1766_v12  ;;  %3825 = vst [vmem:[#allocation2_spill] sm:$0xff] %v3586_v60 }
 0x19d   : > { %v3589_v29 = vadd.f32 %v1733_v20, %v3466_v48  ;;  %v3592_v46 = vadd.f32 %v1747_v57, %v3474_v58  ;;  %v3595_v49 = vadd.f32 %v1761_v63, %v3502_v7  ;;  %v1782_v53 = vadd.f32 %v1781_v1, %v1780_v42  ;;  %v1799_v48 = vld [vmem:[%s3816_s1 + $0x40] sm:$0xf]  ;;  %v1800_v58 = vld [vmem:[%s3816_s1 + $0x48] sm:$0xf]  ;;  %v1818_v42 = vpop.permute.xlu0 %1817 }
 0x19e   : > { %v3598_v44 = vadd.f32 %v1775_v62, %v3510_v0  ;;  %v3601_v33 = vadd.f32 %v1684_v51, %v3409_v61  ;;  %v3604_v36 = vadd.f32 %v1698_v17, %v3427_v3  ;;  %v3607_v35 = vadd.f32 %v1712_v40, %v3452_v23  ;;  %v1820_v0 = vpop.permute.xlu1 %1819  ;;  %v1801_v61 = vld [vmem:[%s3816_s1 + $0x90] sm:$0xf] }
 0x19f   : > { %v3616_v7 = vadd.f32 %v1726_v2, %v3460_v19  ;;  %v3624_v26 = vadd.f32 %v1740_v15, %v3470_v52  ;;  %v3627_v10 = vadd.f32 %v1754_v45, %v3478_v28  ;;  %v3630_v19 = vadd.f32 %v1768_v11, %v3506_v13  ;;  %v1804_v52 = vld [vmem:[%s3816_s1 + $0xe8] sm:$0xf] }
 0x1a0   : > { %3826 = vst [vmem:[#allocation3_spill] sm:$0xff] %v3598_v44  ;;  %v3640_v8 = vadd.f32 %v1782_v53, %v3513_v9  ;;  %v3657_v4 = vsel %vm1821_vm8, %v1816_v18, %v1818_v42  ;;  %v3660_v56 = vsel %vm1821_vm8, %v1818_v42, %v1820_v0 }
 0x1a1   : > { %3827 = vst [vmem:[#allocation4_spill] sm:$0xff] %v3630_v19  ;;  %v1826_v39 = vmul.f32 %v3657_v4, %v1799_v48  ;;  %v1827_v27 = vmul.f32 %v3660_v56, %v1800_v58  ;;  %v1828_v34 = vmul.f32 %v3657_v4, %v1801_v61  ;;  %v1829_v41 = vmul.f32 %v3660_v56, %v1802_v16 }
 0x1a2   : > { %3828 = vst [vmem:[#allocation5_spill] sm:$0xff] %v3640_v8  ;;  %v1830_v63 = vmul.f32 %v3657_v4, %v1803_v38  ;;  %v1831_v18 = vmul.f32 %v3660_v56, %v1804_v52  ;;  %v1832_v30 = vmul.f32 %v3657_v4, %v1805_v24  ;;  %v1833_v5 = vmul.f32 %v3660_v56, %v1806_v32 }
 0x1a3   : > { %v1834_v55 = vmul.f32 %v3657_v4, %v1807_v43  ;;  %v1835_v62 = vmul.f32 %v3660_v56, %v1808_v14  ;;  %v1842_v51 = vsel %vm274_vm0, %v1826_v39, 0.0  ;;  %v1849_v17 = vsel %vm274_vm0, %v1827_v27, 0.0 }
 0x1a4   : > { %v1856_v40 = vsel %vm274_vm0, %v1828_v34, 0.0  ;;  %v1863_v2 = vsel %vm274_vm0, %v1829_v41, 0.0  ;;  %v1843_v15 = vrot.slane %v1842_v51, 4  ;;  %v1850_v45 = vrot.slane %v1849_v17, 4 }
 0x1a5   : > { %v1857_v11 = vrot.slane %v1856_v40, 4  ;;  %v1864_v53 = vrot.slane %v1863_v2, 4  ;;  %v1870_v48 = vsel %vm274_vm0, %v1830_v63, 0.0  ;;  %v1877_v58 = vsel %vm274_vm0, %v1831_v18, 0.0  ;;  %v1809_v63 = vld [vmem:[%s3816_s1 + $0x1d0] sm:$0xf] }
 0x1a6   : > { %v1884_v0 = vsel %vm274_vm0, %v1832_v30, 0.0  ;;  %v1891_v61 = vsel %vm274_vm0, %v1833_v5, 0.0  ;;  %v1844_v42 = vadd.f32 %v1843_v15, %v1842_v51  ;;  %v1851_v16 = vadd.f32 %v1850_v45, %v1849_v17  ;;  %v1810_v18 = vld [vmem:[%s3816_s1 + $0x1d8] sm:$0xf]  ;;  %v1813_v15 = vld [vmem:[%s3816_s1 + $0x270] sm:$0xf] }
 0x1a7   : > { %v1858_v38 = vadd.f32 %v1857_v11, %v1856_v40  ;;  %v1865_v52 = vadd.f32 %v1864_v53, %v1863_v2  ;;  %v1871_v24 = vrot.slane %v1870_v48, 4  ;;  %v1878_v32 = vrot.slane %v1877_v58, 4  ;;  %v1811_v40 = vld [vmem:[%s3816_s1 + $0x220] sm:$0xf]  ;;  %v1812_v2 = vld [vmem:[%s3816_s1 + $0x228] sm:$0xf] }
 0x1a8   : > { %v1885_v43 = vrot.slane %v1884_v0, 4  ;;  %v1892_v14 = vrot.slane %v1891_v61, 4  ;;  %v1845_v39 = vrot.slane %v1844_v42, 2  ;;  %v1852_v27 = vrot.slane %v1851_v16, 2 }
 0x1a9   : > { %v1859_v34 = vrot.slane %v1858_v38, 2  ;;  %v1866_v41 = vrot.slane %v1865_v52, 2  ;;  %v1872_v30 = vadd.f32 %v1871_v24, %v1870_v48  ;;  %v1879_v5 = vadd.f32 %v1878_v32, %v1877_v58  ;;  %v1814_v58 = vld [vmem:[%s3816_s1 + $0x278] sm:$0xf] }
 0x1aa   : > { %v1886_v51 = vadd.f32 %v1885_v43, %v1884_v0  ;;  %v1893_v17 = vadd.f32 %v1892_v14, %v1891_v61  ;;  %v1846_v45 = vadd.f32 %v1845_v39, %v1844_v42  ;;  %v3707_v11 = vadd.f32 %v1852_v27, %v1851_v16 }
 0x1ab   : > { %v1860_v53 = vadd.f32 %v1859_v34, %v1858_v38  ;;  %v3709_v48 = vadd.f32 %v1866_v41, %v1865_v52  ;;  %v1873_v0 = vrot.slane %v1872_v30, 2  ;;  %v1880_v61 = vrot.slane %v1879_v5, 2 }
 0x1ac   : > { %v1887_v24 = vrot.slane %v1886_v51, 2  ;;  %v1894_v32 = vrot.slane %v1893_v17, 2  ;;  %v1836_v43 = vmul.f32 %v3657_v4, %v1809_v63  ;;  %v1837_v14 = vmul.f32 %v3660_v56, %v1810_v18 }
 0x1ad   : > { %v1847_v1 = vrot.slane %v1846_v45, 1  ;;  %v1861_v21 = vrot.slane %v1860_v53, 1  ;;  %v1874_v42 = vadd.f32 %v1873_v0, %v1872_v30  ;;  %v1881_v16 = vadd.f32 %v1880_v61, %v1879_v5 }
 0x1ae   : > { %v1888_v39 = vadd.f32 %v1887_v24, %v1886_v51  ;;  %v3716_v38 = vadd.f32 %v1894_v32, %v1893_v17  ;;  %v1838_v52 = vmul.f32 %v3657_v4, %v1811_v40  ;;  %v1839_v27 = vmul.f32 %v3660_v56, %v1812_v2 }
 0x1af   : > { %v1840_v34 = vmul.f32 %v3657_v4, %v1813_v15  ;;  %v1841_v41 = vmul.f32 %v3660_v56, %v1814_v58  ;;  %v3722_v57 = vadd.f32 %v1847_v1, %v1846_v45  ;;  %v1854_v63 = vrot.slane %v3707_v11, 1 }
 0x1b0   : > { %v3725_v18 = vadd.f32 %v1861_v21, %v1860_v53  ;;  %v1868_v30 = vrot.slane %v3709_v48, 1  ;;  %v1898_v5 = vsel %vm274_vm0, %v1834_v55, 0.0  ;;  %v1905_v51 = vsel %vm274_vm0, %v1835_v62, 0.0 }
 0x1b1   : > { %v1912_v17 = vsel %vm274_vm0, %v1836_v43, 0.0  ;;  %v1919_v40 = vsel %vm274_vm0, %v1837_v14, 0.0  ;;  %v1875_v2 = vrot.slane %v1874_v42, 1  ;;  %v1882_v4 = vrot.slane %v1881_v16, 1 }
 0x1b2   : > { %v1889_v15 = vrot.slane %v1888_v39, 1  ;;  %v1896_v56 = vrot.slane %v3716_v38, 1  ;;  %v1899_v1 = vrot.slane %v1898_v5, 4  ;;  %v1906_v45 = vrot.slane %v1905_v51, 4 }
 0x1b3   : > { %v1913_v58 = vrot.slane %v1912_v17, 4  ;;  %v1920_v21 = vrot.slane %v1919_v40, 4  ;;  %v1926_v53 = vsel %vm274_vm0, %v1838_v52, 0.0  ;;  %v1933_v0 = vsel %vm274_vm0, %v1839_v27, 0.0 }
 0x1b4   : > { %v1940_v55 = vsel %vm274_vm0, %v1840_v34, 0.0  ;;  %v1947_v62 = vsel %vm274_vm0, %v1841_v41, 0.0  ;;  %v1900_v61 = vadd.f32 %v1899_v1, %v1898_v5  ;;  %v1907_v24 = vadd.f32 %v1906_v45, %v1905_v51 }
 0x1b5   : > { %v1914_v32 = vadd.f32 %v1913_v58, %v1912_v17  ;;  %v1921_v43 = vadd.f32 %v1920_v21, %v1919_v40  ;;  %v1927_v14 = vrot.slane %v1926_v53, 4  ;;  %v1934_v20 = vrot.slane %v1933_v0, 4 }
 0x1b6   : > { %v1941_v6 = vrot.slane %v1940_v55, 4  ;;  %v1948_v12 = vrot.slane %v1947_v62, 4  ;;  %v1901_v37 = vrot.slane %v1900_v61, 2  ;;  %v1908_v9 = vrot.slane %v1907_v24, 2 }
 0x1b7   : > { %v1915_v22 = vrot.slane %v1914_v32, 2  ;;  %v1922_v13 = vrot.slane %v1921_v43, 2  ;;  %v1928_v28 = vadd.f32 %v1927_v14, %v1926_v53  ;;  %v1935_v52 = vadd.f32 %v1934_v20, %v1933_v0 }
 0x1b8   : > { %v1942_v54 = vadd.f32 %v1941_v6, %v1940_v55  ;;  %v1949_v27 = vadd.f32 %v1948_v12, %v1947_v62  ;;  %v1902_v23 = vadd.f32 %v1901_v37, %v1900_v61  ;;  %v1909_v34 = vadd.f32 %v1908_v9, %v1907_v24 }
 0x1b9   : > { %v1916_v3 = vadd.f32 %v1915_v22, %v1914_v32  ;;  %v1923_v41 = vadd.f32 %v1922_v13, %v1921_v43  ;;  %v1929_v5 = vrot.slane %v1928_v28, 2  ;;  %v1936_v51 = vrot.slane %v1935_v52, 2 }
 0x1ba   : > { %v1943_v17 = vrot.slane %v1942_v54, 2  ;;  %v1950_v40 = vrot.slane %v1949_v27, 2  ;;  %v1903_v1 = vrot.slane %v1902_v23, 1  ;;  %v1910_v45 = vrot.slane %v1909_v34, 1 }
 0x1bb   : > { %v1917_v58 = vrot.slane %v1916_v3, 1  ;;  %v1924_v21 = vrot.slane %v1923_v41, 1  ;;  %v1930_v8 = vadd.f32 %v1929_v5, %v1928_v28  ;;  %v1937_v60 = vadd.f32 %v1936_v51, %v1935_v52 }
 0x1bc   : > { %v1944_v44 = vadd.f32 %v1943_v17, %v1942_v54  ;;  %v1951_v19 = vadd.f32 %v1950_v40, %v1949_v27  ;;  %v1869_v20 = vadd.f32 %v1868_v30, %v3709_v48  ;;  %v1876_v6 = vadd.f32 %v1875_v2, %v1874_v42 }
 0x1bd   : > { %v1883_v12 = vadd.f32 %v1882_v4, %v1881_v16  ;;  %v1890_v37 = vadd.f32 %v1889_v15, %v1888_v39  ;;  %v1931_v9 = vrot.slane %v1930_v8, 1  ;;  %v1938_v22 = vrot.slane %v1937_v60, 1  ;;  %v3835_v4 = vld [vmem:[#allocation5_spill] sm:$0xff] }
 0x1be   : > { %v1945_v13 = vrot.slane %v1944_v44, 1  ;;  %v1952_v53 = vrot.slane %v1951_v19, 1  ;;  %v1855_v0 = vadd.f32 %v1854_v63, %v3707_v11  ;;  %v1897_v55 = vadd.f32 %v1896_v56, %v3716_v38 }
 0x1bf   : > { %v1904_v62 = vadd.f32 %v1903_v1, %v1902_v23  ;;  %v1911_v61 = vadd.f32 %v1910_v45, %v1909_v34  ;;  %v1918_v28 = vadd.f32 %v1917_v58, %v1916_v3  ;;  %v1925_v54 = vadd.f32 %v1924_v21, %v1923_v41 }
 0x1c0   : > { %v1932_v24 = vadd.f32 %v1931_v9, %v1930_v8  ;;  %v1956_v48 = vadd.f32 %v3725_v18, %v3569_v31  ;;  %v1939_v42 = vadd.f32 %v1938_v22, %v1937_v60  ;;  %v1946_v16 = vadd.f32 %v1945_v13, %v1944_v44 }
 0x1c1   : > { %v1957_v39 = vadd.f32 %v1869_v20, %v3604_v36  ;;  %v1958_v30 = vadd.f32 %v1876_v6, %v3573_v47  ;;  %v1953_v11 = vadd.f32 %v1952_v53, %v1951_v19  ;;  %v1954_v23 = vadd.f32 %v3722_v57, %v3565_v25 }
 0x1c2   : > { %v1959_v38 = vadd.f32 %v1883_v12, %v3607_v35  ;;  %v1960_v3 = vadd.f32 %v1890_v37, %v3576_v59  ;;  %v1955_v8 = vadd.f32 %v1855_v0, %v3601_v33  ;;  %v1961_v31 = vadd.f32 %v1897_v55, %v3616_v7  ;;  %v3830_v59 = vld [vmem:[#allocation4_spill] sm:$0xff]  ;;  %v3831_v33 = vld [vmem:[#allocation3_spill] sm:$0xff]  ;;  %v3832_v7 = vld [vmem:[#allocation2_spill] sm:$0xff] }
 0x1c3   : > { %v1962_v60 = vadd.f32 %v1904_v62, %v3589_v29  ;;  %v1963_v44 = vadd.f32 %v1911_v61, %v3624_v26  ;;  %v1964_v47 = vadd.f32 %v1918_v28, %v3592_v46  ;;  %v1965_v36 = vadd.f32 %v1925_v54, %v3627_v10 }
 0x1c4   : > { %v1966_v25 = vadd.f32 %v1932_v24, %v3595_v49  ;;  %v3829_v35 = vrot.slane %v3581_v50, 1  ;;  %v1967_v57 = vadd.f32 %v1939_v42, %v3830_v59  ;;  %v1968_v63 = vadd.f32 %v1946_v16, %v3831_v33 }
 0x1c5   : > { %v3833_v18 = vrot.slane %v3832_v7, 1  ;;  %v3834_v26 = vrot.slane %v3581_v50, 2  ;;  %v1969_v46 = vadd.f32 %v1953_v11, %v3835_v4  ;;  %v2004_v10 = vadd.f32 %v3581_v50, %v1954_v23 }
 0x1c6   : > { %v2006_v19 = vadd.f32 %v3829_v35, %v1956_v48  ;;  %v3836_v49 = vrot.slane %v3832_v7, 2  ;;  %v3837_v56 = vrot.slane %v3581_v50, 3  ;;  %v2005_v43 = vadd.f32 %v3832_v7, %v1955_v8 }
 0x1c7   : > { %v2007_v29 = vadd.f32 %v3833_v18, %v1957_v39  ;;  %v2008_v2 = vadd.f32 %v3834_v26, %v1958_v30  ;;  %v3838_v14 = vrot.slane %v3832_v7, 3  ;;  %v3839_v27 = vrot.slane %v3581_v50, 4 }
 0x1c8   : > { %v2009_v15 = vadd.f32 %v3836_v49, %v1959_v38  ;;  %v2010_v32 = vadd.f32 %v3837_v56, %v1960_v3  ;;  %v3840_v41 = vrot.slane %v3832_v7, 4  ;;  %v3841_v51 = vrot.slane %v3581_v50, 5 }
 0x1c9   : > { %v2011_v52 = vadd.f32 %v3838_v14, %v1961_v31  ;;  %v2012_v34 = vadd.f32 %v3839_v27, %v1962_v60  ;;  %v3842_v40 = vrot.slane %v3832_v7, 5  ;;  %v2036_v45 = vrot.slane %v2006_v19, 7 }
 0x1ca   : > { %v2013_v5 = vadd.f32 %v3840_v41, %v1963_v44  ;;  %v2014_v17 = vadd.f32 %v3841_v51, %v1964_v47  ;;  %v2039_v58 = vrot.slane %v2008_v2, 6  ;;  %v3843_v21 = vrot.slane %v3581_v50, 6 }
 0x1cb   : > { %v2015_v1 = vadd.f32 %v3842_v40, %v1965_v36  ;;  %v3844_v6 = vrot.slane %v3832_v7, 6  ;;  %v3845_v37 = vrot.slane %v3581_v50, 7  ;;  %v2057_v22 = vrot.slane %v2007_v29, 7 }
 0x1cc   : > { %v2016_v20 = vadd.f32 %v3843_v21, %v1966_v25  ;;  %v3846_v13 = vrot.slane %v3832_v7, 7  ;;  %v2038_v0 = vsel %vm2037_vm9, %v2036_v45, %v2004_v10  ;;  %v2042_v55 = vrot.slane %v2010_v32, 5 }
 0x1cd   : > { %v2017_v12 = vadd.f32 %v3844_v6, %v1967_v57  ;;  %v2018_v9 = vadd.f32 %v3845_v37, %v1968_v63  ;;  %v2059_v62 = vrot.slane %v2009_v15, 6  ;;  %v2041_v61 = vsel %vm2040_vm10, %v2039_v58, %v2038_v0 }
 0x1ce   : > { %v2019_v53 = vadd.f32 %v3846_v13, %v1969_v46  ;;  %v2045_v28 = vrot.slane %v2012_v34, 4  ;;  %v2058_v54 = vsel %vm2037_vm9, %v2057_v22, %v2005_v43  ;;  %v2061_v24 = vrot.slane %v2011_v52, 5 }
 0x1cf   : > { %v2044_v48 = vsel %vm2043_vm11, %v2042_v55, %v2041_v61  ;;  %v2048_v42 = vrot.slane %v2014_v17, 3  ;;  %v2060_v50 = vsel %vm2040_vm10, %v2059_v62, %v2058_v54  ;;  %v2063_v16 = vrot.slane %v2013_v5, 4 }
 0x1d0   : > { %v2047_v39 = vsel %vm2046_vm12, %v2045_v28, %v2044_v48  ;;  %v2051_v30 = vrot.slane %v2016_v20, 2  ;;  %v2062_v11 = vsel %vm2043_vm11, %v2061_v24, %v2060_v50  ;;  %v2065_v23 = vrot.slane %v2015_v1, 3 }
 0x1d1   : > { %v2050_v38 = vsel %vm2049_vm13, %v2048_v42, %v2047_v39  ;;  %v2054_v3 = vrot.slane %v2018_v9, 1  ;;  %v2064_v8 = vsel %vm2046_vm12, %v2063_v16, %v2062_v11  ;;  %v2067_v31 = vrot.slane %v2017_v12, 2 }
 0x1d2   : > { %v2053_v60 = vsel %vm2052_vm14, %v2051_v30, %v2050_v38  ;;  %v2066_v44 = vsel %vm2049_vm13, %v2065_v23, %v2064_v8  ;;  %v2069_v47 = vrot.slane %v2019_v53, 1 }
 0x1d3   : > { %v2056_v36 = vsel %vm2055_vm15, %v2054_v3, %v2053_v60  ;;  %v2068_v25 = vsel %vm2052_vm14, %v2067_v31, %v2066_v44 }
 0x1d4   : > { %v2070_v35 = vsel %vm2055_vm15, %v2069_v47, %v2068_v25  ;;  %2073 = vst [vmem:[%s237_s23] sm:$0xff] %v2056_v36 }
 0x1d5   : > { %2074 = vst [vmem:[%s237_s23 + $0x8] sm:$0xff] %v2070_v35 }
 0x1d6 PF: > { %s13_s14 = sadd.s32 1, %s2260_s14   ;;  %s3847_s12 = smov %s2256_s13 }
 0x1d7   : > { %p10_p5 = scmp.ge.s32.totalorder %s13_s14, 4   ;;  %s3848_s13 = smov %s3850_s15 }
 0x1d9   :  { %12 = sbr.rel (!%p10_p5) target bundleno = 2 (0x2), region = 68 }

</bundles_post_ra>
